<compile_context>
chip_gen: v5e
topology: v5e:2x2
jax: 0.10.0
libtpu: 0.0.40
codegen_flags: <defaults>
</compile_context>

<pallas_src>
import jax
import jax.numpy as jnp
from jax.experimental import pallas as pl
from jax.experimental.pallas import tpu as pltpu

HIDDEN = 512
OUT_DIM = 200
OUT_PAD = 256          # next multiple of 128 >= 200 -> lane-dense output store
TB_MAX = 1024          # batch tile; sized against v7x's 64 MiB VMEM (~5 MiB used)


def _round_up(n, m):
    return ((n + m - 1) // m) * m


def decoder_kernel(z_ref, w1_ref, b1_ref, w2_ref, b2_ref, w3_ref, b3_ref,
                   out_ref):
    # Layer 1: Linear(latent -> 512) + Swish   (bf16 MXU, f32 accumulate)
    z = z_ref[...].astype(jnp.bfloat16)
    h = jnp.dot(z, w1_ref[...], preferred_element_type=jnp.float32) + b1_ref[...]
    h = h * jax.nn.sigmoid(h)                      # Swish in f32 (VPU/EUP)

    # Layer 2: Linear(512 -> 512) + Swish
    h = jnp.dot(h.astype(jnp.bfloat16), w2_ref[...],
                preferred_element_type=jnp.float32) + b2_ref[...]
    h = h * jax.nn.sigmoid(h)

    # Head: Linear(512 -> 200), zero-padded to 256 lanes, then sigmoid.
    o = jnp.dot(h.astype(jnp.bfloat16), w3_ref[...],
                preferred_element_type=jnp.float32) + b3_ref[...]
    out_ref[...] = jax.nn.sigmoid(o)


def mhd_trajectory_decoder(z, params, *, tb_max=TB_MAX):
    """z: [B, latent_dim] float32. Returns sigmoid(decoder(z)) of shape [B, 200]."""
    B, L = z.shape

    # Pick the batch tile: big (near-roofline) tiles when B is large, otherwise
    # one sublane-aligned tile covering the whole (padded) batch.
    if B >= tb_max:
        tb = tb_max
    else:
        tb = max(8, _round_up(B, 8))
    b_pad = _round_up(B, tb)
    if b_pad != B:
        z = jnp.pad(z, ((0, b_pad - B), (0, 0)))

    grid = (b_pad // tb,)

    w_bytes = sum(int(params[k].size) * params[k].dtype.itemsize
                  for k in ("w1", "b1", "w2", "b2", "w3", "b3"))
    cost = pl.CostEstimate(
        flops=2 * b_pad * (L * HIDDEN + HIDDEN * HIDDEN + HIDDEN * OUT_PAD),
        transcendentals=b_pad * (HIDDEN + HIDDEN + OUT_PAD),
        bytes_accessed=b_pad * L * 4 + w_bytes + b_pad * OUT_PAD * 4,
    )

    out = pl.pallas_call(
        decoder_kernel,
        out_shape=jax.ShapeDtypeStruct((b_pad, OUT_PAD), jnp.float32),
        grid=grid,
        in_specs=[
            pl.BlockSpec((tb, L), lambda i: (i, 0)),            # z tile
            pl.BlockSpec((L, HIDDEN), lambda i: (0, 0)),        # w1 (resident)
            pl.BlockSpec((1, HIDDEN), lambda i: (0, 0)),        # b1
            pl.BlockSpec((HIDDEN, HIDDEN), lambda i: (0, 0)),   # w2
            pl.BlockSpec((1, HIDDEN), lambda i: (0, 0)),        # b2
            pl.BlockSpec((HIDDEN, OUT_PAD), lambda i: (0, 0)),  # w3 (padded)
            pl.BlockSpec((1, OUT_PAD), lambda i: (0, 0)),       # b3 (padded)
        ],
        out_specs=pl.BlockSpec((tb, OUT_PAD), lambda i: (i, 0)),
        compiler_params=pltpu.CompilerParams(
            dimension_semantics=("parallel",),       # v7x: shard batch over 2 TCs
            vmem_limit_bytes=32 * 1024 * 1024,       # explicit, safe on 64 MiB v7x
        ),
        cost_estimate=cost,
    )(z, params["w1"], params["b1"], params["w2"], params["b2"],
      params["w3"], params["b3"])

    return out[:B, :OUT_DIM]


def init_params(key, latent_dim):
    """torch.nn.Linear-style init; weights stored [in, out] in bf16, biases f32."""
    def linear(key, fan_in, fan_out, pad_out=None):
        kw, kb = jax.random.split(key)
        bound = 1.0 / (fan_in ** 0.5)
        w = jax.random.uniform(kw, (fan_in, fan_out), jnp.float32, -bound, bound)
        b = jax.random.uniform(kb, (1, fan_out), jnp.float32, -bound, bound)
        if pad_out is not None and pad_out > fan_out:
            w = jnp.pad(w, ((0, 0), (0, pad_out - fan_out)))
            b = jnp.pad(b, ((0, 0), (0, pad_out - fan_out)))
        return w.astype(jnp.bfloat16), b.astype(jnp.float32)

    k1, k2, k3 = jax.random.split(key, 3)
    w1, b1 = linear(k1, latent_dim, HIDDEN)
    w2, b2 = linear(k2, HIDDEN, HIDDEN)
    w3, b3 = linear(k3, HIDDEN, OUT_DIM, pad_out=OUT_PAD)
    return dict(w1=w1, b1=b1, w2=w2, b2=b2, w3=w3, b3=b3)


def reference_forward(z, p):
    """Pure-JAX f32 reference using the same (bf16-stored) weights."""
    def swish(x):
        return x * jax.nn.sigmoid(x)
    w1 = p["w1"].astype(jnp.float32)
    w2 = p["w2"].astype(jnp.float32)
    w3 = p["w3"].astype(jnp.float32)
    h = swish(z @ w1 + p["b1"])
    h = swish(h @ w2 + p["b2"])
    o = h @ w3 + p["b3"]
    return jax.nn.sigmoid(o)[:, :OUT_DIM]


if __name__ == "__main__":
    key = jax.random.PRNGKey(0)
    k_z, k_p = jax.random.split(key)

    batch = 2
    latent_dim = 32

    z = jax.random.normal(k_z, (batch, latent_dim), jnp.float32)
    params = init_params(k_p, latent_dim)

    out = mhd_trajectory_decoder(z, params)
    jax.block_until_ready(out)

    out_ref = reference_forward(z, params)
    assert out.shape == (batch, OUT_DIM)
    # bf16 activation casts inside the kernel -> loosen tolerance vs f32 ref.
    assert jnp.allclose(out, out_ref, atol=2e-2, rtol=2e-2), (
        float(jnp.max(jnp.abs(out - out_ref))))
    assert bool(jnp.all((out >= 0.0) & (out <= 1.0)))

    print("KERNEL_OK")
</pallas_src>

<mosaic_0001>
module attributes {stable_mosaic.version = 11 : i64} {
  func.func @decoder_kernel(%arg0: i32, %arg1: memref<8x32xf32, #tpu.memory_space<vmem>>, %arg2: memref<32x512xbf16, #tpu.memory_space<vmem>>, %arg3: memref<1x512xf32, #tpu.memory_space<vmem>>, %arg4: memref<512x512xbf16, #tpu.memory_space<vmem>>, %arg5: memref<1x512xf32, #tpu.memory_space<vmem>>, %arg6: memref<512x256xbf16, #tpu.memory_space<vmem>>, %arg7: memref<1x256xf32, #tpu.memory_space<vmem>>, %arg8: memref<8x256xf32, #tpu.memory_space<vmem>>) attributes {dimension_semantics = [#tpu.dimension_semantics<parallel>], iteration_bounds = array<i64: 1>, scalar_prefetch = 0 : i64, scratch_operands = 0 : i64, tpu.core_type = #tpu.core_type<tc>, window_params = [{transform_indices = @transform_0, window_bounds = array<i64: 8, 32>}, {pipeline_mode = #tpu.pipeline_mode<synchronous>, transform_indices = @transform_1, window_bounds = array<i64: 32, 512>}, {pipeline_mode = #tpu.pipeline_mode<synchronous>, transform_indices = @transform_2, window_bounds = array<i64: 1, 512>}, {pipeline_mode = #tpu.pipeline_mode<synchronous>, transform_indices = @transform_3, window_bounds = array<i64: 512, 512>}, {pipeline_mode = #tpu.pipeline_mode<synchronous>, transform_indices = @transform_4, window_bounds = array<i64: 1, 512>}, {pipeline_mode = #tpu.pipeline_mode<synchronous>, transform_indices = @transform_5, window_bounds = array<i64: 512, 256>}, {pipeline_mode = #tpu.pipeline_mode<synchronous>, transform_indices = @transform_6, window_bounds = array<i64: 1, 256>}, {transform_indices = @transform_7, window_bounds = array<i64: 8, 256>}]} {
    %c0 = arith.constant 0 : index
    %c0_0 = arith.constant 0 : index
    %0 = vector.load %arg1[%c0, %c0_0] : memref<8x32xf32, #tpu.memory_space<vmem>>, vector<8x32xf32>
    %1 = arith.truncf %0 : vector<8x32xf32> to vector<8x32xbf16>
    %c0_1 = arith.constant 0 : index
    %c0_2 = arith.constant 0 : index
    %2 = vector.load %arg2[%c0_1, %c0_2] : memref<32x512xbf16, #tpu.memory_space<vmem>>, vector<32x512xbf16>
    %cst = arith.constant dense<0.000000e+00> : vector<8x512xf32>
    %3 = tpu.matmul %1, %2, %cst {dimension_numbers = #tpu.dot_dimension_numbers<[1], [0], [0], [1], [0, 0, 1, 1], [], []>} : vector<8x32xbf16>, vector<32x512xbf16>, vector<8x512xf32> -> vector<8x512xf32>
    %c0_3 = arith.constant 0 : index
    %c0_4 = arith.constant 0 : index
    %4 = vector.load %arg3[%c0_3, %c0_4] : memref<1x512xf32, #tpu.memory_space<vmem>>, vector<1x512xf32>
    %5 = vector.broadcast %4 : vector<1x512xf32> to vector<8x512xf32>
    %6 = arith.addf %3, %5 : vector<8x512xf32>
    %7 = arith.negf %6 : vector<8x512xf32>
    %8 = math.exp %7 : vector<8x512xf32>
    %cst_5 = arith.constant 1.000000e+00 : f32
    %9 = vector.broadcast %cst_5 : f32 to vector<8x512xf32>
    %10 = arith.addf %9, %8 : vector<8x512xf32>
    %11 = arith.divf %9, %10 : vector<8x512xf32>
    %12 = arith.mulf %6, %11 : vector<8x512xf32>
    %13 = arith.truncf %12 : vector<8x512xf32> to vector<8x512xbf16>
    %c0_6 = arith.constant 0 : index
    %c0_7 = arith.constant 0 : index
    %14 = vector.load %arg4[%c0_6, %c0_7] : memref<512x512xbf16, #tpu.memory_space<vmem>>, vector<512x512xbf16>
    %cst_8 = arith.constant dense<0.000000e+00> : vector<8x512xf32>
    %15 = tpu.matmul %13, %14, %cst_8 {dimension_numbers = #tpu.dot_dimension_numbers<[1], [0], [0], [1], [0, 0, 1, 1], [], []>} : vector<8x512xbf16>, vector<512x512xbf16>, vector<8x512xf32> -> vector<8x512xf32>
    %c0_9 = arith.constant 0 : index
    %c0_10 = arith.constant 0 : index
    %16 = vector.load %arg5[%c0_9, %c0_10] : memref<1x512xf32, #tpu.memory_space<vmem>>, vector<1x512xf32>
    %17 = vector.broadcast %16 : vector<1x512xf32> to vector<8x512xf32>
    %18 = arith.addf %15, %17 : vector<8x512xf32>
    %19 = arith.negf %18 : vector<8x512xf32>
    %20 = math.exp %19 : vector<8x512xf32>
    %cst_11 = arith.constant 1.000000e+00 : f32
    %21 = vector.broadcast %cst_11 : f32 to vector<8x512xf32>
    %22 = arith.addf %21, %20 : vector<8x512xf32>
    %23 = arith.divf %21, %22 : vector<8x512xf32>
    %24 = arith.mulf %18, %23 : vector<8x512xf32>
    %25 = arith.truncf %24 : vector<8x512xf32> to vector<8x512xbf16>
    %c0_12 = arith.constant 0 : index
    %c0_13 = arith.constant 0 : index
    %26 = vector.load %arg6[%c0_12, %c0_13] : memref<512x256xbf16, #tpu.memory_space<vmem>>, vector<512x256xbf16>
    %cst_14 = arith.constant dense<0.000000e+00> : vector<8x256xf32>
    %27 = tpu.matmul %25, %26, %cst_14 {dimension_numbers = #tpu.dot_dimension_numbers<[1], [0], [0], [1], [0, 0, 1, 1], [], []>} : vector<8x512xbf16>, vector<512x256xbf16>, vector<8x256xf32> -> vector<8x256xf32>
    %c0_15 = arith.constant 0 : index
    %c0_16 = arith.constant 0 : index
    %28 = vector.load %arg7[%c0_15, %c0_16] : memref<1x256xf32, #tpu.memory_space<vmem>>, vector<1x256xf32>
    %29 = vector.broadcast %28 : vector<1x256xf32> to vector<8x256xf32>
    %30 = arith.addf %27, %29 : vector<8x256xf32>
    %31 = arith.negf %30 : vector<8x256xf32>
    %32 = math.exp %31 : vector<8x256xf32>
    %cst_17 = arith.constant 1.000000e+00 : f32
    %33 = vector.broadcast %cst_17 : f32 to vector<8x256xf32>
    %34 = arith.addf %33, %32 : vector<8x256xf32>
    %35 = arith.divf %33, %34 : vector<8x256xf32>
    %c0_18 = arith.constant 0 : index
    %c0_19 = arith.constant 0 : index
    %36 = vector.load %arg8[%c0_18, %c0_19] : memref<8x256xf32, #tpu.memory_space<vmem>>, vector<8x256xf32>
    tpu.vector_store %arg8[%c0_18, %c0_19], %35 {strides = array<i32>} : memref<8x256xf32, #tpu.memory_space<vmem>>, vector<8x256xf32>,
    return
  }
  func.func @transform_0(%arg0: i32) -> (i32, i32) {
    %c0_i32 = arith.constant 0 : i32
    %c0_i32_0 = arith.constant 0 : i32
    return %arg0, %c0_i32 : i32, i32
  }
  func.func @transform_1(%arg0: i32) -> (i32, i32) {
    %c0_i32 = arith.constant 0 : i32
    %c0_i32_0 = arith.constant 0 : i32
    %c0_i32_1 = arith.constant 0 : i32
    return %c0_i32, %c0_i32_0 : i32, i32
  }
  func.func @transform_2(%arg0: i32) -> (i32, i32) {
    %c0_i32 = arith.constant 0 : i32
    %c0_i32_0 = arith.constant 0 : i32
    %c0_i32_1 = arith.constant 0 : i32
    return %c0_i32, %c0_i32_0 : i32, i32
  }
  func.func @transform_3(%arg0: i32) -> (i32, i32) {
    %c0_i32 = arith.constant 0 : i32
    %c0_i32_0 = arith.constant 0 : i32
    %c0_i32_1 = arith.constant 0 : i32
    return %c0_i32, %c0_i32_0 : i32, i32
  }
  func.func @transform_4(%arg0: i32) -> (i32, i32) {
    %c0_i32 = arith.constant 0 : i32
    %c0_i32_0 = arith.constant 0 : i32
    %c0_i32_1 = arith.constant 0 : i32
    return %c0_i32, %c0_i32_0 : i32, i32
  }
  func.func @transform_5(%arg0: i32) -> (i32, i32) {
    %c0_i32 = arith.constant 0 : i32
    %c0_i32_0 = arith.constant 0 : i32
    %c0_i32_1 = arith.constant 0 : i32
    return %c0_i32, %c0_i32_0 : i32, i32
  }
  func.func @transform_6(%arg0: i32) -> (i32, i32) {
    %c0_i32 = arith.constant 0 : i32
    %c0_i32_0 = arith.constant 0 : i32
    %c0_i32_1 = arith.constant 0 : i32
    return %c0_i32, %c0_i32_0 : i32, i32
  }
  func.func @transform_7(%arg0: i32) -> (i32, i32) {
    %c0_i32 = arith.constant 0 : i32
    %c0_i32_0 = arith.constant 0 : i32
    return %arg0, %c0_i32 : i32, i32
  }
}

</mosaic_0001>

<bundles_post_ra>
// kernel: tpu_custom_call.1
= control target key start
LH: loop header
LB: loop body
LE: loop exit
PB: predicated region body
PF: predicated region fallthrough
CT: control target
= control target key end

     0   :  { %12 = vsyncpa [#allocation3], 0  ;;  %s3373_s0 = inlined_call_operand.hbm [shape: f32[8,32], index: 0, kind: input, shape index: {}]   ;;  %s3374_s1 = inlined_call_operand.hbm [shape: bf16[32,512], index: 1, kind: input, shape index: {}]   ;;  %s3375_s2 = inlined_call_operand.hbm [shape: f32[1,512], index: 2, kind: input, shape index: {}]   ;;  %s3376_s3 = inlined_call_operand.hbm [shape: bf16[512,512], index: 3, kind: input, shape index: {}]   ;;  %s3377_s4 = inlined_call_operand.hbm [shape: f32[1,512], index: 4, kind: input, shape index: {}]   ;;  %s3378_s5 = inlined_call_operand.hbm [shape: bf16[512,256], index: 5, kind: input, shape index: {}]   ;;  %s3379_s6 = inlined_call_operand.vmem [shape: f32[1,256], index: 6, kind: input, shape index: {}]   ;;  %s3380_s7 = inlined_call_operand.hbm [shape: f32[8,256], index: 7, kind: output, shape index: {}]  }
   0x1   :  { %13 = vsyncpa [#allocation6], 0 }
   0x2   :  { %14 = vsyncpa [#allocation9], 0 }
   0x3   :  { %15 = vsyncpa [#allocation12], 0  ;;  %s32_s26 = sshll.u32 %s3374_s1, 4  ;;  %s33_s26 = int_to_ptr.hbm [resolvable:$true] %s32_s26 }
   0x4   :  { %16 = vsyncpa [#allocation4], 0  ;;  %s3183_s27 = smov [#allocation5]   ;;  %s56_s8 = sshll.u32 %s3376_s3, 4  ;;  %s57_s8 = int_to_ptr.hbm [resolvable:$true] %s56_s8 }
   0x5   :  { %s34_s28 = sshll.u32 %s3183_s27, 4  ;;  %s3184_s9 = smov 256   ;;  %s35_s28 = int_to_ptr.vmem [resolvable:$true] %s34_s28 }
   0x6   :  { %s3185_s10 = smov 16   ;;  %s3186_s11 = smov [#allocation8]  }
   0x7   :  { %40 = dma.hbm_to_vmem [thread:$0]  %s33_s26, 1024, %s35_s28, [#allocation6], %s3184_s9, %s3184_s9, %s3185_s10  }
   0x8   :  { %s58_s12 = sshll.u32 %s3186_s11, 4  ;;  %s22_s15 = sshll.u32 %s3373_s0, 4  ;;  %s59_s12 = int_to_ptr.vmem [resolvable:$true] %s58_s12  ;;  %s23_s15 = int_to_ptr.hbm [resolvable:$true] %s22_s15 }
   0x9   :  { %64 = dma.hbm_to_vmem [thread:$0]  %s57_s8, 16384, %s59_s12, [#allocation9], %s3184_s9, %s3184_s9, %s3185_s10  }
   0xa   :  { %s46_s17 = sshll.u32 %s3375_s2, 4  ;;  %s3187_s18 = smov [#allocation2]   ;;  %s47_s17 = int_to_ptr.hbm [resolvable:$true] %s46_s17 }
   0xb   :  { %s24_s19 = sshll.u32 %s3187_s18, 4  ;;  %s3188_s3 = smov [#allocation7]   ;;  %s25_s19 = int_to_ptr.vmem [resolvable:$true] %s24_s19 }
   0xc   :  { %27 = dma.hbm_to_vmem [thread:$0]  %s23_s15, 128, %s25_s19, [#allocation3]  }
   0xd   :  { %s48_s20 = sshll.u32 %s3188_s3, 4  ;;  %s70_s23 = sshll.u32 %s3377_s4, 4  ;;  %s49_s20 = int_to_ptr.vmem [resolvable:$true] %s48_s20  ;;  %s71_s23 = int_to_ptr.hbm [resolvable:$true] %s70_s23 }
   0xe   :  { %51 = dma.hbm_to_vmem [thread:$0]  %s47_s17, 64, %s49_s20, [#allocation6]  }
   0xf   :  { %s80_s25 = sshll.u32 %s3378_s5, 4  ;;  %s3189_s26 = smov [#allocation10]   ;;  %s81_s25 = int_to_ptr.hbm [resolvable:$true] %s80_s25 }
  0x10   :  { %s72_s2 = sshll.u32 %s3189_s26, 4  ;;  %s3190_s27 = smov [#allocation11]   ;;  %s73_s2 = int_to_ptr.vmem [resolvable:$true] %s72_s2 }
  0x11   :  { %75 = dma.hbm_to_vmem [thread:$0]  %s71_s23, 64, %s73_s2, [#allocation9]  }
  0x12   :  { %s82_s28 = sshll.u32 %s3190_s27, 4  ;;  %s3191_s29 = smov 128   ;;  %s83_s28 = int_to_ptr.vmem [resolvable:$true] %s82_s28 }
  0x13   :  { %s3192_s30 = smov 8  }
  0x14   :  { %88 = dma.hbm_to_vmem [thread:$0]  %s81_s25, 8192, %s83_s28, [#allocation12], %s3191_s29, %s3191_s29, %s3192_s30  }
  0x15   :  { %3173 = dma.done.wait [#allocation3], 128  }
  0x16   :  { %3174 = vsyncadd [#allocation3], 4294967168 }
  0x17   :  { %3175 = dma.done.wait [#allocation6], 1088  }
  0x18   :  { %3176 = vsyncadd [#allocation6], 4294966208 }
  0x19   :  { %3177 = dma.done.wait [#allocation9], 16448  }
  0x1a   :  { %3178 = vsyncadd [#allocation9], 4294950848 }
  0x1b   :  { %3179 = dma.done.wait [#allocation12], 8192  }
  0x1c   :  { %3180 = vsyncadd [#allocation12], 4294959104  ;;  %v1958_v0 = vld [vmem:[#allocation5 + $0x20] sm:$0xf]  ;;  %v2760_v1 = vld [vmem:[#allocation5 + $0x2c] sm:$0xf0] }
  0x1d   :  { %v2758_v2 = vld [vmem:[#allocation5 + $0x24] sm:$0xf]  ;;  %v1959_v3 = vor.u32 %v2760_v1, %v1958_v0  ;;  %v1960_v4 = vld [vmem:[#allocation5 + $0x30] sm:$0xf0]  ;;  %v1966_v5 = vld [vmem:[#allocation5 + $0x28] sm:$0xf] }
  0x1e   :  { %v2761_v6 = vld [vmem:[#allocation5 + $0x34] sm:$0xf0]  ;;  %v1963_v7 = vor.u32 %v2758_v2, %v1960_v4  ;;  %v2759_v9 = vld [vmem:[#allocation5 + $0x2c] sm:$0xf]  ;;  %v1968_v10 = vld [vmem:[#allocation5 + $0x38] sm:$0xf0] }
  0x1f   :  { %v1967_v8 = vor.u32 %v2761_v6, %v1966_v5  ;;  %v1942_v11 = vld [vmem:[#allocation5] sm:$0xf]  ;;  %186 = vmatpush.bf16.msra.mxu0 %v1959_v3  ;;  %v1971_v12 = vor.u32 %v2759_v9, %v1968_v10  ;;  %v2756_v13 = vld [vmem:[#allocation5 + $0xc] sm:$0xf0]  ;;  %v2754_v14 = vld [vmem:[#allocation5 + $0x4] sm:$0xf] }
  0x20   :  { %v1944_v15 = vld [vmem:[#allocation5 + $0x10] sm:$0xf0]  ;;  %199 = vmatpush.bf16.msra.mxu1 %v1963_v7  ;;  %v1943_v16 = vor.u32 %v2756_v13, %v1942_v11  ;;  %v1950_v18 = vld [vmem:[#allocation5 + $0x8] sm:$0xf]  ;;  %v2757_v19 = vld [vmem:[#allocation5 + $0x14] sm:$0xf0] }
  0x21   :  { %212 = vmatpush.bf16.msra.mxu2 %v1967_v8  ;;  %v1947_v17 = vor.u32 %v2754_v14, %v1944_v15  ;;  %v2755_v20 = vld [vmem:[#allocation5 + $0xc] sm:$0xf]  ;;  %225 = vmatpush.bf16.msra.mxu3 %v1971_v12  ;;  %v1951_v21 = vor.u32 %v2757_v19, %v1950_v18  ;;  %v1952_v22 = vld [vmem:[#allocation5 + $0x18] sm:$0xf0]  ;;  %vm176_vm0 = vcmask 261120   ;;  %s1927_s11 = sshll.u32 %s3380_s7, 4  ;;  %s1928_s11 = int_to_ptr.hbm [resolvable:$true] %s1927_s11 }
  0x22   :  { %v116_v23 = vld [vmem:[#allocation2] sm:$0xff]  ;;  %v2094_v24 = vld [vmem:[#allocation8 + $0xe0] sm:$0xf]  ;;  %v1955_v25 = vor.u32 %v2755_v20, %v1952_v22  ;;  %v2792_v27 = vld [vmem:[#allocation8 + $0xec] sm:$0xf0] }
  0x23   :  { %v117_v26 = vpack.c.bf16 %v116_v23, %v116_v23  ;;  %v2222_v28 = vld [vmem:[#allocation8 + $0x1e0] sm:$0xf]  ;;  %v2824_v29 = vld [vmem:[#allocation8 + $0x1ec] sm:$0xf0]  ;;  %187 = vmatpush.bf16.msra.mxu0 %v1943_v16  ;;  %v2095_v30 = vor.u32 %v2792_v27, %v2094_v24 }
  0x24   :  { %v2223_v31 = vor.u32 %v2824_v29, %v2222_v28  ;;  %v2078_v32 = vld [vmem:[#allocation8 + $0xc0] sm:$0xf]  ;;  %v2788_v33 = vld [vmem:[#allocation8 + $0xcc] sm:$0xf0]  ;;  %200 = vmatpush.bf16.msra.mxu1 %v1947_v17 }
  0x25   :  { %v2206_v34 = vld [vmem:[#allocation8 + $0x1c0] sm:$0xf]  ;;  %213 = vmatpush.bf16.msra.mxu2 %v1951_v21  ;;  %v2820_v35 = vld [vmem:[#allocation8 + $0x1cc] sm:$0xf0]  ;;  %226 = vmatpush.bf16.msra.mxu3 %v1955_v25  ;;  %v2079_v38 = vor.u32 %v2788_v33, %v2078_v32 }
  0x26   :  { %v2350_v36 = vld [vmem:[#allocation8 + $0x2e0] sm:$0xf]  ;;  %v2856_v37 = vld [vmem:[#allocation8 + $0x2ec] sm:$0xf0]  ;;  %1972 = vmatmul.msk.bf16.vlgmr.msra.gmra.mxu0 %vm176_vm0, %v117_v26  ;;  %v2207_v43 = vor.u32 %v2820_v35, %v2206_v34 }
  0x27   :  { %1094 = vmatpush.bf16.msrb.mxu0 %v2095_v30  ;;  %v2351_v39 = vor.u32 %v2856_v37, %v2350_v36  ;;  %v2478_v40 = vld [vmem:[#allocation8 + $0x3e0] sm:$0xf]  ;;  %v2888_v41 = vld [vmem:[#allocation8 + $0x3ec] sm:$0xf0]  ;;  %1973 = vmatmul.msk.bf16.vlgmr.msra.gmra.mxu1 %vm176_vm0, %v117_v26 }
  0x28   :  { %v2062_v42 = vld [vmem:[#allocation8 + $0xa0] sm:$0xf]  ;;  %1107 = vmatpush.bf16.msrb.mxu1 %v2223_v31  ;;  %v2479_v44 = vor.u32 %v2888_v41, %v2478_v40  ;;  %v2784_v45 = vld [vmem:[#allocation8 + $0xac] sm:$0xf0]  ;;  %1974 = vmatmul.msk.bf16.vlgmr.msra.gmra.mxu2 %vm176_vm0, %v117_v26 }
  0x29   :  { %v2190_v46 = vld [vmem:[#allocation8 + $0x1a0] sm:$0xf]  ;;  %v2816_v47 = vld [vmem:[#allocation8 + $0x1ac] sm:$0xf0]  ;;  %1975 = vmatmul.msk.bf16.vlgmr.msra.gmra.mxu3 %vm176_vm0, %v117_v26  ;;  %1120 = vmatpush.bf16.msrb.mxu2 %v2351_v39  ;;  %v2063_v53 = vor.u32 %v2784_v45, %v2062_v42 }
  0x2a   :  { %v2334_v48 = vld [vmem:[#allocation8 + $0x2c0] sm:$0xf]  ;;  %v2852_v49 = vld [vmem:[#allocation8 + $0x2cc] sm:$0xf0]  ;;  %1133 = vmatpush.bf16.msrb.mxu3 %v2479_v44  ;;  %v2191_v58 = vor.u32 %v2816_v47, %v2190_v46  ;;  %v2790_v46 = vld [vmem:[#allocation8 + $0xe4] sm:$0xf] }
  0x2b   :  { %v2462_v50 = vld [vmem:[#allocation8 + $0x3c0] sm:$0xf]  ;;  %v2335_v51 = vor.u32 %v2852_v49, %v2334_v48  ;;  %v2884_v52 = vld [vmem:[#allocation8 + $0x3cc] sm:$0xf0]  ;;  %1095 = vmatpush.bf16.msrb.mxu0 %v2079_v38  ;;  %v2096_v47 = vld [vmem:[#allocation8 + $0xf0] sm:$0xf0] }
  0x2c   :  { %v2463_v54 = vor.u32 %v2884_v52, %v2462_v50  ;;  %v2046_v55 = vld [vmem:[#allocation8 + $0x80] sm:$0xf]  ;;  %v2780_v56 = vld [vmem:[#allocation8 + $0x8c] sm:$0xf0]  ;;  %1108 = vmatpush.bf16.msrb.mxu1 %v2207_v43  ;;  %v2099_v48 = vor.u32 %v2790_v46, %v2096_v47  ;;  %v2822_v49 = vld [vmem:[#allocation8 + $0x1e4] sm:$0xf] }
  0x2d   :  { %v2318_v57 = vld [vmem:[#allocation8 + $0x2a0] sm:$0xf]  ;;  %v2848_v59 = vld [vmem:[#allocation8 + $0x2ac] sm:$0xf0]  ;;  %1121 = vmatpush.bf16.msrb.mxu2 %v2335_v51  ;;  %v2047_v1 = vor.u32 %v2780_v56, %v2046_v55  ;;  %v2224_v50 = vld [vmem:[#allocation8 + $0x1f0] sm:$0xf0] }
  0x2e   :  { %v2446_v60 = vld [vmem:[#allocation8 + $0x3a0] sm:$0xf]  ;;  %v2880_v61 = vld [vmem:[#allocation8 + $0x3ac] sm:$0xf0]  ;;  %v2319_v0 = vor.u32 %v2848_v59, %v2318_v57  ;;  %1134 = vmatpush.bf16.msrb.mxu3 %v2463_v54  ;;  %v2227_v52 = vor.u32 %v2822_v49, %v2224_v50  ;;  %v2080_v59 = vld [vmem:[#allocation8 + $0xd0] sm:$0xf0] }
  0x2f   :  { %v2174_v62 = vld [vmem:[#allocation8 + $0x180] sm:$0xf]  ;;  %v2812_v63 = vld [vmem:[#allocation8 + $0x18c] sm:$0xf0]  ;;  %1096 = vmatpush.bf16.msrb.mxu0 %v2063_v53  ;;  %v2447_v2 = vor.u32 %v2880_v61, %v2446_v60  ;;  %v2818_v60 = vld [vmem:[#allocation8 + $0x1c4] sm:$0xf] }
  0x30   :  { %v2030_v3 = vld [vmem:[#allocation8 + $0x60] sm:$0xf]  ;;  %v2844_v5 = vld [vmem:[#allocation8 + $0x28c] sm:$0xf0]  ;;  %1109 = vmatpush.bf16.msrb.mxu1 %v2191_v58  ;;  %v2175_v6 = vor.u32 %v2812_v63, %v2174_v62  ;;  %v2786_v58 = vld [vmem:[#allocation8 + $0xc4] sm:$0xf] }
  0x31   :  { %v2302_v4 = vld [vmem:[#allocation8 + $0x280] sm:$0xf]  ;;  %v2776_v7 = vld [vmem:[#allocation8 + $0x6c] sm:$0xf0]  ;;  %1122 = vmatpush.bf16.msrb.mxu2 %v2319_v0  ;;  %v2083_v61 = vor.u32 %v2786_v58, %v2080_v59  ;;  %v2208_v62 = vld [vmem:[#allocation8 + $0x1d0] sm:$0xf0] }
  0x32   :  { %v2430_v8 = vld [vmem:[#allocation8 + $0x380] sm:$0xf]  ;;  %v2876_v9 = vld [vmem:[#allocation8 + $0x38c] sm:$0xf0]  ;;  %v2303_v12 = vor.u32 %v2844_v5, %v2302_v4  ;;  %1135 = vmatpush.bf16.msrb.mxu3 %v2447_v2  ;;  %v2031_v13 = vor.u32 %v2776_v7, %v2030_v3  ;;  %v2854_v5 = vld [vmem:[#allocation8 + $0x2e4] sm:$0xf] }
  0x33   :  { %v2158_v10 = vld [vmem:[#allocation8 + $0x160] sm:$0xf]  ;;  %v2808_v11 = vld [vmem:[#allocation8 + $0x16c] sm:$0xf0]  ;;  %1097 = vmatpush.bf16.msrb.mxu0 %v2047_v1  ;;  %v2431_v14 = vor.u32 %v2876_v9, %v2430_v8  ;;  %v2211_v1 = vor.u32 %v2818_v60, %v2208_v62  ;;  %v2352_v7 = vld [vmem:[#allocation8 + $0x2f0] sm:$0xf0] }
  0x34   :  { %v2014_v15 = vld [vmem:[#allocation8 + $0x40] sm:$0xf]  ;;  %v2840_v17 = vld [vmem:[#allocation8 + $0x26c] sm:$0xf0]  ;;  %1110 = vmatpush.bf16.msrb.mxu1 %v2175_v6  ;;  %v2159_v18 = vor.u32 %v2808_v11, %v2158_v10  ;;  %v2886_v8 = vld [vmem:[#allocation8 + $0x3e4] sm:$0xf]  ;;  %v2355_v10 = vor.u32 %v2854_v5, %v2352_v7 }
  0x35   :  { %v2286_v16 = vld [vmem:[#allocation8 + $0x260] sm:$0xf]  ;;  %v2772_v19 = vld [vmem:[#allocation8 + $0x4c] sm:$0xf0]  ;;  %1123 = vmatpush.bf16.msrb.mxu2 %v2303_v12  ;;  %v2480_v9 = vld [vmem:[#allocation8 + $0x3f0] sm:$0xf0] }
  0x36   :  { %v2414_v20 = vld [vmem:[#allocation8 + $0x360] sm:$0xf]  ;;  %v2872_v21 = vld [vmem:[#allocation8 + $0x36c] sm:$0xf0]  ;;  %v2287_v24 = vor.u32 %v2840_v17, %v2286_v16  ;;  %1136 = vmatpush.bf16.msrb.mxu3 %v2431_v14  ;;  %v2015_v25 = vor.u32 %v2772_v19, %v2014_v15  ;;  %v2483_v11 = vor.u32 %v2886_v8, %v2480_v9  ;;  %v2782_v12 = vld [vmem:[#allocation8 + $0xa4] sm:$0xf] }
  0x37   :  { %v2142_v22 = vld [vmem:[#allocation8 + $0x140] sm:$0xf]  ;;  %v2804_v23 = vld [vmem:[#allocation8 + $0x14c] sm:$0xf0]  ;;  %1098 = vmatpush.bf16.msrb.mxu0 %v2031_v13  ;;  %v2415_v26 = vor.u32 %v2872_v21, %v2414_v20  ;;  %v2064_v13 = vld [vmem:[#allocation8 + $0xb0] sm:$0xf0] }
  0x38   :  { %1111 = vmatpush.bf16.msrb.mxu1 %v2159_v18  ;;  %v2143_v27 = vor.u32 %v2804_v23, %v2142_v22  ;;  %v1998_v28 = vld [vmem:[#allocation8 + $0x20] sm:$0xf]  ;;  %v2768_v29 = vld [vmem:[#allocation8 + $0x2c] sm:$0xf0]  ;;  %v2814_v14 = vld [vmem:[#allocation8 + $0x1a4] sm:$0xf]  ;;  %v2067_v15 = vor.u32 %v2782_v12, %v2064_v13 }
  0x39   :  { %1124 = vmatpush.bf16.msrb.mxu2 %v2287_v24  ;;  %v2126_v30 = vld [vmem:[#allocation8 + $0x120] sm:$0xf]  ;;  %v1999_v31 = vor.u32 %v2768_v29, %v1998_v28  ;;  %v2800_v32 = vld [vmem:[#allocation8 + $0x12c] sm:$0xf0]  ;;  %v2192_v16 = vld [vmem:[#allocation8 + $0x1b0] sm:$0xf0] }
  0x3a   :  { %1137 = vmatpush.bf16.msrb.mxu3 %v2415_v26  ;;  %v2127_v33 = vor.u32 %v2800_v32, %v2126_v30  ;;  %v2270_v34 = vld [vmem:[#allocation8 + $0x240] sm:$0xf]  ;;  %v2836_v35 = vld [vmem:[#allocation8 + $0x24c] sm:$0xf0]  ;;  %v2195_v17 = vor.u32 %v2814_v14, %v2192_v16  ;;  %v2850_v18 = vld [vmem:[#allocation8 + $0x2c4] sm:$0xf] }
  0x3b   :  { %1099 = vmatpush.bf16.msrb.mxu0 %v2015_v25  ;;  %v2398_v36 = vld [vmem:[#allocation8 + $0x340] sm:$0xf]  ;;  %v2271_v37 = vor.u32 %v2836_v35, %v2270_v34  ;;  %v2868_v38 = vld [vmem:[#allocation8 + $0x34c] sm:$0xf0]  ;;  %v2336_v19 = vld [vmem:[#allocation8 + $0x2d0] sm:$0xf0] }
  0x3c   :  { %1112 = vmatpush.bf16.msrb.mxu1 %v2143_v27  ;;  %v2399_v39 = vor.u32 %v2868_v38, %v2398_v36  ;;  %v1982_v40 = vld [vmem:[#allocation8] sm:$0xf]  ;;  %v2764_v41 = vld [vmem:[#allocation8 + $0xc] sm:$0xf0]  ;;  %v2882_v20 = vld [vmem:[#allocation8 + $0x3c4] sm:$0xf]  ;;  %v2339_v21 = vor.u32 %v2850_v18, %v2336_v19 }
  0x3d   :  { %v2110_v42 = vld [vmem:[#allocation8 + $0x100] sm:$0xf]  ;;  %1125 = vmatpush.bf16.msrb.mxu2 %v2271_v37  ;;  %v1983_v43 = vor.u32 %v2764_v41, %v1982_v40  ;;  %v2796_v44 = vld [vmem:[#allocation8 + $0x10c] sm:$0xf0]  ;;  %v2464_v22 = vld [vmem:[#allocation8 + $0x3d0] sm:$0xf0] }
  0x3e   :  { %1138 = vmatpush.bf16.msrb.mxu3 %v2399_v39  ;;  %v2111_v45 = vor.u32 %v2796_v44, %v2110_v42  ;;  %v2254_v51 = vld [vmem:[#allocation8 + $0x220] sm:$0xf]  ;;  %v2832_v53 = vld [vmem:[#allocation8 + $0x22c] sm:$0xf0]  ;;  %v2467_v23 = vor.u32 %v2882_v20, %v2464_v22  ;;  %v2778_v24 = vld [vmem:[#allocation8 + $0x84] sm:$0xf] }
  0x3f   :  { %1100 = vmatpush.bf16.msrb.mxu0 %v1999_v31  ;;  %v2382_v54 = vld [vmem:[#allocation8 + $0x320] sm:$0xf]  ;;  %v2864_v55 = vld [vmem:[#allocation8 + $0x32c] sm:$0xf0]  ;;  %v2255_v56 = vor.u32 %v2832_v53, %v2254_v51  ;;  %v2048_v25 = vld [vmem:[#allocation8 + $0x90] sm:$0xf0] }
  0x40   :  { %1113 = vmatpush.bf16.msrb.mxu1 %v2127_v33  ;;  %v2383_v57 = vor.u32 %v2864_v55, %v2382_v54  ;;  %v2238_v63 = vld [vmem:[#allocation8 + $0x200] sm:$0xf]  ;;  %v2828_v0 = vld [vmem:[#allocation8 + $0x20c] sm:$0xf0]  ;;  %v2810_v26 = vld [vmem:[#allocation8 + $0x184] sm:$0xf]  ;;  %v2051_v27 = vor.u32 %v2778_v24, %v2048_v25 }
  0x41   :  { %1126 = vmatpush.bf16.msrb.mxu2 %v2255_v56  ;;  %v2239_v2 = vor.u32 %v2828_v0, %v2238_v63  ;;  %v2366_v3 = vld [vmem:[#allocation8 + $0x300] sm:$0xf]  ;;  %v2860_v4 = vld [vmem:[#allocation8 + $0x30c] sm:$0xf0]  ;;  %v2176_v28 = vld [vmem:[#allocation8 + $0x190] sm:$0xf0] }
  0x42   :  { %1139 = vmatpush.bf16.msrb.mxu3 %v2383_v57  ;;  %v2367_v6 = vor.u32 %v2860_v4, %v2366_v3  ;;  %v2179_v29 = vor.u32 %v2810_v26, %v2176_v28  ;;  %v2846_v30 = vld [vmem:[#allocation8 + $0x2a4] sm:$0xf]  ;;  %v2320_v31 = vld [vmem:[#allocation8 + $0x2b0] sm:$0xf0]  ;;  %v3256_v39 = vld [vmem:[#allocation7] sm:$0xf] }
  0x43   :  { %1101 = vmatpush.bf16.msrb.mxu0 %v1983_v43  ;;  %v2878_v32 = vld [vmem:[#allocation8 + $0x3a4] sm:$0xf]  ;;  %v2323_v33 = vor.u32 %v2846_v30, %v2320_v31  ;;  %v2448_v34 = vld [vmem:[#allocation8 + $0x3b0] sm:$0xf0]  ;;  %v129_v59 = vperm.slane %v3256_v39, 1  ;;  %v130_v12 = vperm.slane %v3256_v39, 2 }
  0x44   :  { %1114 = vmatpush.bf16.msrb.mxu1 %v2111_v45  ;;  %v2451_v35 = vor.u32 %v2878_v32, %v2448_v34  ;;  %v2774_v36 = vld [vmem:[#allocation8 + $0x64] sm:$0xf]  ;;  %v2032_v37 = vld [vmem:[#allocation8 + $0x70] sm:$0xf0] }
  0x45   :  { %1127 = vmatpush.bf16.msrb.mxu2 %v2239_v2  ;;  %v2806_v38 = vld [vmem:[#allocation8 + $0x164] sm:$0xf]  ;;  %v2035_v40 = vor.u32 %v2774_v36, %v2032_v37  ;;  %v2160_v41 = vld [vmem:[#allocation8 + $0x170] sm:$0xf0] }
  0x46   :  { %1140 = vmatpush.bf16.msrb.mxu3 %v2367_v6  ;;  %v2163_v42 = vor.u32 %v2806_v38, %v2160_v41  ;;  %v2842_v43 = vld [vmem:[#allocation8 + $0x284] sm:$0xf]  ;;  %v2304_v44 = vld [vmem:[#allocation8 + $0x290] sm:$0xf0] }
  0x47   :  { %1146 = vmatpush.bf16.msra.mxu0 %v2099_v48  ;;  %v2874_v45 = vld [vmem:[#allocation8 + $0x384] sm:$0xf]  ;;  %v2307_v46 = vor.u32 %v2842_v43, %v2304_v44  ;;  %v2432_v47 = vld [vmem:[#allocation8 + $0x390] sm:$0xf0] }
  0x48   :  { %1159 = vmatpush.bf16.msra.mxu1 %v2227_v52  ;;  %v2435_v48 = vor.u32 %v2874_v45, %v2432_v47  ;;  %v2770_v49 = vld [vmem:[#allocation8 + $0x44] sm:$0xf]  ;;  %v2016_v50 = vld [vmem:[#allocation8 + $0x50] sm:$0xf0]  ;;  %v128_v52 = vperm.slane %v3256_v39, 0 }
  0x49   :  { %1172 = vmatpush.bf16.msra.mxu2 %v2355_v10  ;;  %v2802_v51 = vld [vmem:[#allocation8 + $0x144] sm:$0xf]  ;;  %v2019_v53 = vor.u32 %v2770_v49, %v2016_v50  ;;  %v2144_v54 = vld [vmem:[#allocation8 + $0x150] sm:$0xf0] }
  0x4a   :  { %1185 = vmatpush.bf16.msra.mxu3 %v2483_v11  ;;  %v2147_v55 = vor.u32 %v2802_v51, %v2144_v54  ;;  %v2838_v56 = vld [vmem:[#allocation8 + $0x264] sm:$0xf]  ;;  %v2288_v57 = vld [vmem:[#allocation8 + $0x270] sm:$0xf0] }
  0x4b   :  { %1147 = vmatpush.bf16.msra.mxu0 %v2083_v61  ;;  %v2870_v58 = vld [vmem:[#allocation8 + $0x364] sm:$0xf]  ;;  %v2291_v60 = vor.u32 %v2838_v56, %v2288_v57  ;;  %v2416_v61 = vld [vmem:[#allocation8 + $0x370] sm:$0xf0] }
  0x4c   :  { %1160 = vmatpush.bf16.msra.mxu1 %v2211_v1  ;;  %v2419_v62 = vor.u32 %v2870_v58, %v2416_v61  ;;  %v2766_v63 = vld [vmem:[#allocation8 + $0x24] sm:$0xf]  ;;  %v2000_v0 = vld [vmem:[#allocation8 + $0x30] sm:$0xf0]  ;;  %v3282_v61 = vld [vmem:[#allocation8 + $0xf4] sm:$0xf0] }
  0x4d   :  { %1173 = vmatpush.bf16.msra.mxu2 %v2339_v21  ;;  %v2798_v1 = vld [vmem:[#allocation8 + $0x124] sm:$0xf]  ;;  %v2003_v3 = vor.u32 %v2766_v63, %v2000_v0  ;;  %v2128_v4 = vld [vmem:[#allocation8 + $0x130] sm:$0xf0] }
  0x4e   :  { %1186 = vmatpush.bf16.msra.mxu3 %v2467_v23  ;;  %v2131_v7 = vor.u32 %v2798_v1, %v2128_v4  ;;  %v2834_v8 = vld [vmem:[#allocation8 + $0x244] sm:$0xf]  ;;  %v2272_v9 = vld [vmem:[#allocation8 + $0x250] sm:$0xf0]  ;;  %v131_v23 = vperm.slane %v3256_v39, 3 }
  0x4f   :  { %1148 = vmatpush.bf16.msra.mxu0 %v2067_v15  ;;  %v2866_v10 = vld [vmem:[#allocation8 + $0x344] sm:$0xf]  ;;  %v2275_v13 = vor.u32 %v2834_v8, %v2272_v9  ;;  %v2400_v14 = vld [vmem:[#allocation8 + $0x350] sm:$0xf0]  ;;  %v3284_v1 = vld [vmem:[#allocation8 + $0x1e8] sm:$0xf] }
  0x50   :  { %1161 = vmatpush.bf16.msra.mxu1 %v2195_v17  ;;  %v2403_v16 = vor.u32 %v2866_v10, %v2400_v14  ;;  %v2762_v17 = vld [vmem:[#allocation8 + $0x4] sm:$0xf]  ;;  %v1984_v18 = vld [vmem:[#allocation8 + $0x10] sm:$0xf0] }
  0x51   :  { %1174 = vmatpush.bf16.msra.mxu2 %v2323_v33  ;;  %v1987_v20 = vor.u32 %v2762_v17, %v1984_v18  ;;  %v2794_v21 = vld [vmem:[#allocation8 + $0x104] sm:$0xf]  ;;  %v2112_v22 = vld [vmem:[#allocation8 + $0x110] sm:$0xf0] }
  0x52   :  { %1187 = vmatpush.bf16.msra.mxu3 %v2451_v35  ;;  %v2115_v24 = vor.u32 %v2794_v21, %v2112_v22  ;;  %v2830_v25 = vld [vmem:[#allocation8 + $0x224] sm:$0xf]  ;;  %v2256_v26 = vld [vmem:[#allocation8 + $0x230] sm:$0xf0] }
  0x53   :  { %1149 = vmatpush.bf16.msra.mxu0 %v2051_v27  ;;  %v2259_v28 = vor.u32 %v2830_v25, %v2256_v26  ;;  %v2384_v30 = vld [vmem:[#allocation8 + $0x330] sm:$0xf0]  ;;  %v2826_v37 = vld [vmem:[#allocation8 + $0x204] sm:$0xf] }
  0x54   :  { %1162 = vmatpush.bf16.msra.mxu1 %v2179_v29  ;;  %v2862_v29 = vld [vmem:[#allocation8 + $0x324] sm:$0xf]  ;;  %v2240_v38 = vld [vmem:[#allocation8 + $0x210] sm:$0xf0] }
  0x55   :  { %1175 = vmatpush.bf16.msra.mxu2 %v2307_v46  ;;  %v2387_v34 = vor.u32 %v2862_v29, %v2384_v30  ;;  %v2858_v41 = vld [vmem:[#allocation8 + $0x304] sm:$0xf]  ;;  %v2086_v30 = vld [vmem:[#allocation8 + $0xc8] sm:$0xf] }
  0x56   :  { %1188 = vmatpush.bf16.msra.mxu3 %v2435_v48 }
  0x57   :  { %1150 = vmatpush.bf16.msra.mxu0 %v2035_v40  ;;  %v2243_v40 = vor.u32 %v2826_v37, %v2240_v38 }
  0x58   :  { %1163 = vmatpush.bf16.msra.mxu1 %v2163_v42  ;;  %v2368_v42 = vld [vmem:[#allocation8 + $0x310] sm:$0xf0] }
  0x59   :  { %1176 = vmatpush.bf16.msra.mxu2 %v2291_v60  ;;  %v2371_v45 = vor.u32 %v2858_v41, %v2368_v42  ;;  %v3280_v60 = vld [vmem:[#allocation8 + $0xe8] sm:$0xf] }
  0x5a   :  { %1189 = vmatpush.bf16.msra.mxu3 %v2419_v62  ;;  %v2103_v10 = vor.u32 %v3282_v61, %v3280_v60  ;;  %v2358_v42 = vld [vmem:[#allocation8 + $0x2e8] sm:$0xf] }
  0x5b   :  { %1151 = vmatpush.bf16.msra.mxu0 %v2019_v53 }
  0x5c   :  { %1164 = vmatpush.bf16.msra.mxu1 %v2147_v55 }
  0x5d   :  { %1177 = vmatpush.bf16.msra.mxu2 %v2275_v13 }
  0x5e   :  { %1190 = vmatpush.bf16.msra.mxu3 %v2403_v16 }
  0x5f   :  { %1152 = vmatpush.bf16.msra.mxu0 %v2003_v3 }
  0x60   :  { %1165 = vmatpush.bf16.msra.mxu1 %v2131_v7 }
  0x61   :  { %1178 = vmatpush.bf16.msra.mxu2 %v2259_v28 }
  0x62   :  { %1191 = vmatpush.bf16.msra.mxu3 %v2387_v34 }
  0x63   :  { %1153 = vmatpush.bf16.msra.mxu0 %v1987_v20 }
  0x64   :  { %1166 = vmatpush.bf16.msra.mxu1 %v2115_v24 }
  0x65   :  { %1179 = vmatpush.bf16.msra.mxu2 %v2243_v40 }
  0x66   :  { %1192 = vmatpush.bf16.msra.mxu3 %v2371_v45 }
  0xa3   :  { %v189_v2 = vpop.f32.mrf.mxu0 }
  0xa4   :  { %v3260_v5 = vadd.f32 %v189_v2, %v128_v52  ;;  %v202_v6 = vpop.f32.mrf.mxu1 }
  0xa5   :  { %v3262_v11 = vadd.f32 %v202_v6, %v129_v59  ;;  %v2825_v6 = vld [vmem:[#allocation8 + $0x1f4] sm:$0xf0] }
  0xa6   :  { %v1976_v15 = vmul.f32 -1.442695, %v3260_v5 }
  0xa7   :  { %v1977_v19 = vmul.f32 -1.442695, %v3262_v11 }
  0xa8   :  { %2965 = vpow2.f32 %v1976_v15  ;;  %v2231_v15 = vor.u32 %v2825_v6, %v3284_v1  ;;  %v2885_v6 = vld [vmem:[#allocation8 + $0x3d4] sm:$0xf0] }
  0xa9   :  { %2967 = vpow2.f32 %v1977_v19 }
  0xab   :  { %v215_v27 = vpop.f32.mrf.mxu2  ;;  %v191_v33 = vpop.f32.mrf.mxu0 }
  0xac   :  { %v3268_v31 = vadd.f32 %v215_v27, %v130_v12  ;;  %v228_v32 = vpop.f32.mrf.mxu3  ;;  %v204_v36 = vpop.f32.mrf.mxu1 }
  0xad   :  { %v3270_v35 = vadd.f32 %v228_v32, %v131_v23  ;;  %v2789_v32 = vld [vmem:[#allocation8 + $0xd4] sm:$0xf0] }
  0xae   :  { %v1978_v39 = vmul.f32 -1.442695, %v3268_v31  ;;  %v2966_v43 = vpop.eup %2965  ;;  %v2087_v41 = vor.u32 %v2789_v32, %v2086_v30  ;;  %v2877_v30 = vld [vmem:[#allocation8 + $0x394] sm:$0xf0]  ;;  %v2150_v32 = vld [vmem:[#allocation8 + $0x148] sm:$0xf] }
  0xaf   :  { %v1979_v44 = vmul.f32 -1.442695, %v3270_v35  ;;  %v2968_v46 = vpop.eup %2967  ;;  %v244_v47 = vadd.f32 1.0, %v2966_v43  ;;  %v2857_v43 = vld [vmem:[#allocation8 + $0x2f4] sm:$0xf0] }
  0xb0   :  { %2969 = vpow2.f32 %v1978_v39  ;;  %v245_v48 = vadd.f32 1.0, %v2968_v46  ;;  %v2214_v39 = vld [vmem:[#allocation8 + $0x1c8] sm:$0xf] }
  0xb1   :  { %2971 = vpow2.f32 %v1979_v44  ;;  %vm253_vm1 = vweird.f32 %v244_v47  ;;  %v257_v62 = vand.u32 2147483647, %v244_v47  ;;  %v259_v63 = vand.u32 2147483648, %v244_v47  ;;  %v2486_v46 = vld [vmem:[#allocation8 + $0x3e8] sm:$0xf] }
  0xb2   :  { %2973 = vrcp.f32 %v244_v47  ;;  %v272_v3 = vand.u32 2147483647, %v245_v48  ;;  %v274_v4 = vand.u32 2147483648, %v245_v48  ;;  %vm268_vm3 = vweird.f32 %v245_v48 }
  0xb3   :  { %2975 = vrcp.f32 %v245_v48  ;;  %v217_v49 = vpop.f32.mrf.mxu2  ;;  %v260_v12 = vor.u32 1.1754944e-38, %v259_v63  ;;  %vm258_vm6 = vcmp.eq.f32.partialorder %v257_v62, 8.507059e+37  ;;  %v2342_v62 = vld [vmem:[#allocation8 + $0x2c8] sm:$0xf]  ;;  %v2853_v63 = vld [vmem:[#allocation8 + $0x2d4] sm:$0xf0] }
  0xb4   :  { %v230_v50 = vpop.f32.mrf.mxu3  ;;  %vm273_vm8 = vcmp.eq.f32.partialorder %v272_v3, 8.507059e+37  ;;  %v275_v18 = vor.u32 1.1754944e-38, %v274_v4  ;;  %v2054_v3 = vld [vmem:[#allocation8 + $0x88] sm:$0xf] }
  0xb6   :  { %v2970_v51 = vpop.eup %2969 }
  0xb7   :  { %v2972_v52 = vpop.eup %2971  ;;  %v3274_v53 = vadd.f32 1.0, %v2970_v51  ;;  %v2070_v51 = vld [vmem:[#allocation8 + $0xa8] sm:$0xf] }
  0xb8   :  { %v2974_v54 = vpop.eup %2973  ;;  %v3276_v55 = vadd.f32 1.0, %v2972_v52  ;;  %v2785_v52 = vld [vmem:[#allocation8 + $0xb4] sm:$0xf0] }
  0xb9   :  { %v2976_v56 = vpop.eup %2975  ;;  %v249_v57 = vmul.f32 %v2974_v54, %v244_v47  ;;  %2977 = vrcp.f32 %v3274_v53  ;;  %vm254_vm2 = vweird.f32 %v2974_v54  ;;  %v287_v25 = vand.u32 2147483647, %v3274_v53  ;;  %v2889_v47 = vld [vmem:[#allocation8 + $0x3f4] sm:$0xf0] }
  0xba   :  { %v264_v58 = vmul.f32 %v2976_v56, %v245_v48  ;;  %2979 = vrcp.f32 %v3276_v55  ;;  %vm269_vm4 = vweird.f32 %v2976_v56  ;;  %vm255_vm5 = vmor %vm253_vm1, %vm254_vm2  ;;  %v289_v26 = vand.u32 2147483648, %v3274_v53 }
  0xbb   :  { %v250_v59 = vsub.f32 1.0, %v249_v57  ;;  %vm270_vm7 = vmor %vm268_vm3, %vm269_vm4  ;;  %vm283_vm10 = vweird.f32 %v3274_v53  ;;  %v302_v34 = vand.u32 2147483647, %v3276_v55  ;;  %vm288_vm13 = vcmp.eq.f32.partialorder %v287_v25, 8.507059e+37  ;;  %v2817_v57 = vld [vmem:[#allocation8 + $0x1b4] sm:$0xf0] }
  0xbc   :  { %v265_v0 = vsub.f32 1.0, %v264_v58  ;;  %v290_v40 = vor.u32 1.1754944e-38, %v289_v26  ;;  %vm298_vm14 = vweird.f32 %v3276_v55  ;;  %v2359_v58 = vor.u32 %v2857_v43, %v2358_v42  ;;  %v2006_v42 = vld [vmem:[#allocation8 + $0x28] sm:$0xf]  ;;  %v2769_v43 = vld [vmem:[#allocation8 + $0x34] sm:$0xf0] }
  0xbd   :  { %v251_v2 = vmul.f32 %v2974_v54, %v250_v59  ;;  %vm303_vm0 = vcmp.eq.f32.partialorder %v302_v34, 8.507059e+37  ;;  %v2071_v61 = vor.u32 %v2785_v52, %v2070_v51  ;;  %v2805_v34 = vld [vmem:[#allocation8 + $0x154] sm:$0xf0]  ;;  %v2406_v51 = vld [vmem:[#allocation8 + $0x348] sm:$0xf] }
  0xbe   :  { %v266_v7 = vmul.f32 %v2976_v56, %v265_v0  ;;  %v2487_v0 = vor.u32 %v2889_v47, %v2486_v46  ;;  %v2801_v46 = vld [vmem:[#allocation8 + $0x134] sm:$0xf0] }
  0xbf   :  { %v2978_v8 = vpop.eup %2977  ;;  %v252_v9 = vadd.f32 %v2974_v54, %v251_v2  ;;  %v2470_v2 = vld [vmem:[#allocation8 + $0x3c8] sm:$0xf] }
  0xc0   :  { %v267_v13 = vadd.f32 %v2976_v56, %v266_v7  ;;  %v279_v14 = vmul.f32 %v2978_v8, %v3274_v53  ;;  %v2980_v16 = vpop.eup %2979  ;;  %vm284_vm9 = vweird.f32 %v2978_v8  ;;  %v2182_v7 = vld [vmem:[#allocation8 + $0x188] sm:$0xf] }
  0xc1   :  { %v256_v17 = vsel %vm255_vm5, %v2974_v54, %v252_v9  ;;  %v294_v22 = vmul.f32 %v2980_v16, %v3276_v55  ;;  %vm299_vm11 = vweird.f32 %v2980_v16  ;;  %vm285_vm12 = vmor %vm283_vm10, %vm284_vm9  ;;  %v2343_v9 = vor.u32 %v2853_v63, %v2342_v62  ;;  %v2104_v62 = vld [vmem:[#allocation8 + $0xf8] sm:$0xf0]  ;;  %v2823_v63 = vld [vmem:[#allocation8 + $0x1ec] sm:$0xf] }
  0xc2   :  { %v261_v19 = vsel %vm258_vm6, %v260_v12, %v256_v17  ;;  %v271_v20 = vsel %vm270_vm7, %v2976_v56, %v267_v13  ;;  %v280_v21 = vsub.f32 1.0, %v279_v14  ;;  %vm300_vm15 = vmor %vm298_vm14, %vm299_vm11  ;;  %v2198_v56 = vld [vmem:[#allocation8 + $0x1a8] sm:$0xf]  ;;  %v2849_v12 = vld [vmem:[#allocation8 + $0x2b4] sm:$0xf0]  ;;  %v2471_v13 = vor.u32 %v2885_v6, %v2470_v2 }
  0xc3   :  { %v308_v23 = vmul.f32 %v261_v19, %v3260_v5  ;;  %v276_v24 = vsel %vm273_vm8, %v275_v18, %v271_v20  ;;  %v295_v29 = vsub.f32 1.0, %v294_v22  ;;  %v304_v5 = vand.u32 2147483648, %v3276_v55  ;;  %v2777_v17 = vld [vmem:[#allocation8 + $0x74] sm:$0xf0]  ;;  %v2166_v19 = vld [vmem:[#allocation8 + $0x168] sm:$0xf] }
  0xc4   :  { %v309_v27 = vmul.f32 %v276_v24, %v3262_v11  ;;  %v281_v28 = vmul.f32 %v2978_v8, %v280_v21  ;;  %v2821_v11 = vld [vmem:[#allocation8 + $0x1d4] sm:$0xf0]  ;;  %v2199_v1 = vor.u32 %v2817_v57, %v2198_v56  ;;  %v1990_v56 = vld [vmem:[#allocation8 + $0x8] sm:$0xf] }
  0xc5   :  { %v3296_v33 = vpack.c.bf16 %v308_v23, %v308_v23  ;;  %v296_v38 = vmul.f32 %v2980_v16, %v295_v29  ;;  %v305_v49 = vor.u32 1.1754944e-38, %v304_v5  ;;  %v2215_v50 = vor.u32 %v2821_v11, %v2214_v39  ;;  %v2881_v18 = vld [vmem:[#allocation8 + $0x3b4] sm:$0xf0]  ;;  %v2310_v23 = vld [vmem:[#allocation8 + $0x288] sm:$0xf] }
  0xc6   :  { %v3301_v36 = vpack.c.bf16 %v309_v27, %v309_v27  ;;  %v282_v37 = vadd.f32 %v2978_v8, %v281_v28  ;;  %v2809_v20 = vld [vmem:[#allocation8 + $0x174] sm:$0xf0]  ;;  %v2438_v27 = vld [vmem:[#allocation8 + $0x388] sm:$0xf] }
  0xc7   :  { %1102 = vmatmul.bf16.vlgmr.msrb.gmra.mxu0 %v3296_v33  ;;  %v297_v45 = vadd.f32 %v2980_v16, %v296_v38  ;;  %v2845_v24 = vld [vmem:[#allocation8 + $0x294] sm:$0xf0]  ;;  %v2167_v26 = vor.u32 %v2809_v20, %v2166_v19  ;;  %v2022_v28 = vld [vmem:[#allocation8 + $0x48] sm:$0xf]  ;;  %v2439_v11 = vor.u32 %v2877_v30, %v2438_v27  ;;  %v2855_v19 = vld [vmem:[#allocation8 + $0x2ec] sm:$0xf] }
  0xc8   :  { %v286_v44 = vsel %vm285_vm12, %v2978_v8, %v282_v37  ;;  %1115 = vmatmul.bf16.vlgmr.msrb.gmra.mxu1 %v3301_v36  ;;  %1198 = vmatpush.bf16.msrb.mxu0 %v2103_v10  ;;  %v2813_v8 = vld [vmem:[#allocation8 + $0x194] sm:$0xf0]  ;;  %v2326_v10 = vld [vmem:[#allocation8 + $0x2a8] sm:$0xf]  ;;  %v2311_v5 = vor.u32 %v2845_v24, %v2310_v23  ;;  %v2360_v20 = vld [vmem:[#allocation8 + $0x2f8] sm:$0xf0] }
  0xc9   :  { %v291_v48 = vsel %vm288_vm13, %v290_v40, %v286_v44  ;;  %1211 = vmatpush.bf16.msrb.mxu1 %v2231_v15  ;;  %v301_v54 = vsel %vm300_vm15, %v2980_v16, %v297_v45  ;;  %v2183_v14 = vor.u32 %v2813_v8, %v2182_v7  ;;  %v2454_v15 = vld [vmem:[#allocation8 + $0x3a8] sm:$0xf]  ;;  %v2327_v21 = vor.u32 %v2849_v12, %v2326_v10  ;;  %v2773_v29 = vld [vmem:[#allocation8 + $0x54] sm:$0xf0]  ;;  %v2787_v10 = vld [vmem:[#allocation8 + $0xcc] sm:$0xf] }
  0xca   :  { %v310_v53 = vmul.f32 %v291_v48, %v3268_v31  ;;  %v306_v55 = vsel %vm303_vm0, %v305_v49, %v301_v54  ;;  %v2781_v31 = vld [vmem:[#allocation8 + $0x94] sm:$0xf0]  ;;  %v2038_v16 = vld [vmem:[#allocation8 + $0x68] sm:$0xf]  ;;  %v2455_v25 = vor.u32 %v2881_v18, %v2454_v15  ;;  %v2023_v37 = vor.u32 %v2773_v29, %v2022_v28  ;;  %v2216_v15 = vld [vmem:[#allocation8 + $0x1d8] sm:$0xf0] }
  0xcb   :  { %v311_v60 = vmul.f32 %v306_v55, %v3270_v35  ;;  %v2055_v35 = vor.u32 %v2781_v31, %v2054_v3  ;;  %v2039_v22 = vor.u32 %v2777_v17, %v2038_v16  ;;  %v2294_v38 = vld [vmem:[#allocation8 + $0x268] sm:$0xf]  ;;  %v2841_v39 = vld [vmem:[#allocation8 + $0x274] sm:$0xf0]  ;;  %v2151_v40 = vor.u32 %v2805_v34, %v2150_v32  ;;  %v2488_v27 = vld [vmem:[#allocation8 + $0x3f8] sm:$0xf0] }
  0xcc   :  { %v3308_v59 = vpack.c.bf16 %v310_v53, %v310_v53  ;;  %1199 = vmatpush.bf16.msrb.mxu0 %v2087_v41  ;;  %v2422_v41 = vld [vmem:[#allocation8 + $0x368] sm:$0xf]  ;;  %v2873_v44 = vld [vmem:[#allocation8 + $0x374] sm:$0xf0]  ;;  %v2295_v47 = vor.u32 %v2841_v39, %v2294_v38  ;;  %v2007_v48 = vor.u32 %v2769_v43, %v2006_v42  ;;  %v2783_v28 = vld [vmem:[#allocation8 + $0xac] sm:$0xf]  ;;  %v2363_v30 = vor.u32 %v2855_v19, %v2360_v20 }
  0xcd   :  { %1212 = vmatpush.bf16.msrb.mxu1 %v2215_v50  ;;  %v3311_v4 = vpack.c.bf16 %v311_v60, %v311_v60  ;;  %v2134_v45 = vld [vmem:[#allocation8 + $0x128] sm:$0xf]  ;;  %v2837_v50 = vld [vmem:[#allocation8 + $0x254] sm:$0xf0]  ;;  %v2423_v52 = vor.u32 %v2873_v44, %v2422_v41  ;;  %v2791_v60 = vld [vmem:[#allocation8 + $0xec] sm:$0xf] }
  0xce   :  { %1128 = vmatmul.bf16.vlgmr.msrb.gmra.mxu2 %v3308_v59  ;;  %v2278_v49 = vld [vmem:[#allocation8 + $0x248] sm:$0xf]  ;;  %v2135_v53 = vor.u32 %v2801_v46, %v2134_v45  ;;  %v2869_v54 = vld [vmem:[#allocation8 + $0x354] sm:$0xf0]  ;;  %v2107_v7 = vor.u32 %v2791_v60, %v2104_v62  ;;  %v2072_v29 = vld [vmem:[#allocation8 + $0xb8] sm:$0xf0] }
  0xcf   :  { %1224 = vmatpush.bf16.msrb.mxu2 %v2359_v58  ;;  %1141 = vmatmul.bf16.vlgmr.msrb.gmra.mxu3 %v3311_v4  ;;  %v2765_v57 = vld [vmem:[#allocation8 + $0x14] sm:$0xf0]  ;;  %v2118_v55 = vld [vmem:[#allocation8 + $0x108] sm:$0xf]  ;;  %v2407_v31 = vor.u32 %v2869_v54, %v2406_v51  ;;  %v2815_v32 = vld [vmem:[#allocation8 + $0x1ac] sm:$0xf] }
  0xd0   :  { %1200 = vmatpush.bf16.msrb.mxu0 %v2071_v61  ;;  %1237 = vmatpush.bf16.msrb.mxu3 %v2487_v0  ;;  %v2797_v58 = vld [vmem:[#allocation8 + $0x114] sm:$0xf0]  ;;  %v2279_v61 = vor.u32 %v2837_v50, %v2278_v49  ;;  %v2232_v0 = vld [vmem:[#allocation8 + $0x1f8] sm:$0xf0]  ;;  %v2262_v2 = vld [vmem:[#allocation8 + $0x228] sm:$0xf] }
  0xd1   :  { %1213 = vmatpush.bf16.msrb.mxu1 %v2199_v1  ;;  %v1991_v1 = vor.u32 %v2765_v57, %v1990_v56  ;;  %v2833_v3 = vld [vmem:[#allocation8 + $0x234] sm:$0xf0]  ;;  %v2119_v6 = vor.u32 %v2797_v58, %v2118_v55  ;;  %v2235_v8 = vor.u32 %v2823_v63, %v2232_v0  ;;  %v2246_v16 = vld [vmem:[#allocation8 + $0x208] sm:$0xf]  ;;  %v2200_v34 = vld [vmem:[#allocation8 + $0x1b8] sm:$0xf0] }
  0xd2   :  { %v2263_v12 = vor.u32 %v2833_v3, %v2262_v2  ;;  %v2829_v17 = vld [vmem:[#allocation8 + $0x214] sm:$0xf0]  ;;  %v2374_v23 = vld [vmem:[#allocation8 + $0x308] sm:$0xf]  ;;  %v2344_v38 = vld [vmem:[#allocation8 + $0x2d8] sm:$0xf0]  ;;  %v2203_v41 = vor.u32 %v2815_v32, %v2200_v34 }
  0xd3   :  { %1225 = vmatpush.bf16.msrb.mxu2 %v2343_v9  ;;  %v2390_v9 = vld [vmem:[#allocation8 + $0x328] sm:$0xf]  ;;  %v2861_v24 = vld [vmem:[#allocation8 + $0x314] sm:$0xf0]  ;;  %v2472_v42 = vld [vmem:[#allocation8 + $0x3d8] sm:$0xf0] }
  0xd4   :  { %1201 = vmatpush.bf16.msrb.mxu0 %v2055_v35  ;;  %1238 = vmatpush.bf16.msrb.mxu3 %v2471_v13  ;;  %v2865_v35 = vld [vmem:[#allocation8 + $0x334] sm:$0xf0]  ;;  %v2088_v13 = vld [vmem:[#allocation8 + $0xd8] sm:$0xf0]  ;;  %v2779_v43 = vld [vmem:[#allocation8 + $0x8c] sm:$0xf] }
  0xd5   :  { %1214 = vmatpush.bf16.msrb.mxu1 %v2183_v14  ;;  %v2819_v14 = vld [vmem:[#allocation8 + $0x1cc] sm:$0xf]  ;;  %v2391_v18 = vor.u32 %v2865_v35, %v2390_v9  ;;  %v2056_v44 = vld [vmem:[#allocation8 + $0x98] sm:$0xf0] }
  0xd6   :  { %v2811_v46 = vld [vmem:[#allocation8 + $0x18c] sm:$0xf]  ;;  %v2328_v49 = vld [vmem:[#allocation8 + $0x2b8] sm:$0xf0]  ;;  %v2059_v51 = vor.u32 %v2779_v43, %v2056_v44 }
  0xd7   :  { %1226 = vmatpush.bf16.msrb.mxu2 %v2327_v21  ;;  %1154 = vmatmul.bf16.vlgmr.msra.gmra.mxu0 %v3296_v33  ;;  %v2091_v21 = vor.u32 %v2787_v10, %v2088_v13  ;;  %v2456_v54 = vld [vmem:[#allocation8 + $0x3b8] sm:$0xf0]  ;;  %v2775_v56 = vld [vmem:[#allocation8 + $0x6c] sm:$0xf] }
  0xd8   :  { %1167 = vmatmul.bf16.vlgmr.msra.gmra.mxu1 %v3301_v36  ;;  %1202 = vmatpush.bf16.msrb.mxu0 %v2039_v22  ;;  %v2219_v22 = vor.u32 %v2819_v14, %v2216_v15  ;;  %v2040_v57 = vld [vmem:[#allocation8 + $0x78] sm:$0xf0]  ;;  %v2807_v58 = vld [vmem:[#allocation8 + $0x16c] sm:$0xf] }
  0xd9   :  { %1239 = vmatpush.bf16.msrb.mxu3 %v2455_v25  ;;  %1215 = vmatpush.bf16.msrb.mxu1 %v2167_v26  ;;  %v2887_v25 = vld [vmem:[#allocation8 + $0x3ec] sm:$0xf]  ;;  %v2247_v26 = vor.u32 %v2829_v17, %v2246_v16  ;;  %v2168_v60 = vld [vmem:[#allocation8 + $0x178] sm:$0xf0]  ;;  %v2043_v0 = vor.u32 %v2775_v56, %v2040_v57 }
  0xda   :  { %v2491_v39 = vor.u32 %v2887_v25, %v2488_v27  ;;  %v2312_v62 = vld [vmem:[#allocation8 + $0x298] sm:$0xf0]  ;;  %v2171_v2 = vor.u32 %v2807_v58, %v2168_v60  ;;  %v2839_v35 = vld [vmem:[#allocation8 + $0x26c] sm:$0xf] }
  0xdb   :  { %1227 = vmatpush.bf16.msrb.mxu2 %v2311_v5  ;;  %v2375_v5 = vor.u32 %v2861_v24, %v2374_v23  ;;  %v2440_v3 = vld [vmem:[#allocation8 + $0x398] sm:$0xf0]  ;;  %v2871_v14 = vld [vmem:[#allocation8 + $0x36c] sm:$0xf] }
  0xdc   :  { %1203 = vmatpush.bf16.msrb.mxu0 %v2023_v37  ;;  %v2851_v37 = vld [vmem:[#allocation8 + $0x2cc] sm:$0xf]  ;;  %v2152_v9 = vld [vmem:[#allocation8 + $0x158] sm:$0xf0] }
  0xdd   :  { %1240 = vmatpush.bf16.msrb.mxu3 %v2439_v11  ;;  %1216 = vmatpush.bf16.msrb.mxu1 %v2151_v40  ;;  %v2075_v11 = vor.u32 %v2783_v28, %v2072_v29  ;;  %v2883_v40 = vld [vmem:[#allocation8 + $0x3cc] sm:$0xf]  ;;  %v2347_v45 = vor.u32 %v2851_v37, %v2344_v38  ;;  %v2296_v10 = vld [vmem:[#allocation8 + $0x278] sm:$0xf0] }
  0xde   :  { %1180 = vmatmul.bf16.vlgmr.msra.gmra.mxu2 %v3308_v59  ;;  %v2475_v50 = vor.u32 %v2883_v40, %v2472_v42  ;;  %v2424_v16 = vld [vmem:[#allocation8 + $0x378] sm:$0xf0]  ;;  %v2767_v17 = vld [vmem:[#allocation8 + $0x2c] sm:$0xf]  ;;  %v2299_v19 = vor.u32 %v2839_v35, %v2296_v10  ;;  %v2602_v10 = vld [vmem:[#allocation11 + $0xd0] sm:$0xf] }
  0xdf   :  { %1228 = vmatpush.bf16.msrb.mxu2 %v2295_v47  ;;  %1193 = vmatmul.bf16.vlgmr.msra.gmra.mxu3 %v3311_v4  ;;  %v2184_v47 = vld [vmem:[#allocation8 + $0x198] sm:$0xf0]  ;;  %v2799_v20 = vld [vmem:[#allocation8 + $0x12c] sm:$0xf]  ;;  %v2427_v24 = vor.u32 %v2871_v14, %v2424_v16  ;;  %v3327_v16 = vld [vmem:[#allocation10] sm:$0xf] }
  0xe0   :  { %1204 = vmatpush.bf16.msrb.mxu0 %v2007_v48  ;;  %v2847_v48 = vld [vmem:[#allocation8 + $0x2ac] sm:$0xf]  ;;  %v2280_v23 = vld [vmem:[#allocation8 + $0x258] sm:$0xf0] }
  0xe1   :  { %1241 = vmatpush.bf16.msrb.mxu3 %v2423_v52  ;;  %1217 = vmatpush.bf16.msrb.mxu1 %v2135_v53  ;;  %v2879_v52 = vld [vmem:[#allocation8 + $0x3ac] sm:$0xf]  ;;  %v2187_v53 = vor.u32 %v2811_v46, %v2184_v47  ;;  %v2331_v55 = vor.u32 %v2847_v48, %v2328_v49  ;;  %v2408_v28 = vld [vmem:[#allocation8 + $0x358] sm:$0xf0] }
  0xe2   :  { %v2459_v63 = vor.u32 %v2879_v52, %v2456_v54  ;;  %v2763_v29 = vld [vmem:[#allocation8 + $0xc] sm:$0xf]  ;;  %v2264_v38 = vld [vmem:[#allocation8 + $0x238] sm:$0xf0]  ;;  %v2546_v54 = vld [vmem:[#allocation11 + $0x60] sm:$0xf] }
  0xe3   :  { %1229 = vmatpush.bf16.msrb.mxu2 %v2279_v61  ;;  %v2843_v61 = vld [vmem:[#allocation8 + $0x28c] sm:$0xf]  ;;  %v2392_v42 = vld [vmem:[#allocation8 + $0x338] sm:$0xf0] }
  0xe4   :  { %1205 = vmatpush.bf16.msrb.mxu0 %v1991_v1  ;;  %v2875_v1 = vld [vmem:[#allocation8 + $0x38c] sm:$0xf]  ;;  %v2376_v48 = vld [vmem:[#allocation8 + $0x318] sm:$0xf0] }
  0xe5   :  { %1242 = vmatpush.bf16.msrb.mxu3 %v2407_v31  ;;  %1218 = vmatpush.bf16.msrb.mxu1 %v2119_v6  ;;  %v2771_v31 = vld [vmem:[#allocation8 + $0x4c] sm:$0xf]  ;;  %v2024_v6 = vld [vmem:[#allocation8 + $0x58] sm:$0xf0] }
  0xe6   :  { %v2027_v13 = vor.u32 %v2771_v31, %v2024_v6  ;;  %v2795_v34 = vld [vmem:[#allocation8 + $0x10c] sm:$0xf]  ;;  %v2905_v52 = vld [vmem:[#allocation11 + $0x74] sm:$0xf0]  ;;  %v2610_v31 = vld [vmem:[#allocation11 + $0xe0] sm:$0xf] }
  0xe7   :  { %1230 = vmatpush.bf16.msrb.mxu2 %v2263_v12  ;;  %1206 = vmatmul.bf16.vlgmr.msrb.gmra.mxu0 %v3296_v33  ;;  %v2443_v12 = vor.u32 %v2875_v1, %v2440_v3  ;;  %v2831_v37 = vld [vmem:[#allocation8 + $0x22c] sm:$0xf]  ;;  %v2893_v35 = vld [vmem:[#allocation11 + $0x14] sm:$0xf0] }
  0xe8   :  { %1250 = vmatpush.bf16.msra.mxu0 %v2107_v7  ;;  %1219 = vmatmul.bf16.vlgmr.msrb.gmra.mxu1 %v3301_v36  ;;  %v2315_v7 = vor.u32 %v2843_v61, %v2312_v62  ;;  %v2267_v43 = vor.u32 %v2831_v37, %v2264_v38  ;;  %v2827_v44 = vld [vmem:[#allocation8 + $0x20c] sm:$0xf]  ;;  %v2522_v62 = vld [vmem:[#allocation11 + $0x30] sm:$0xf]  ;;  %v2548_v37 = vld [vmem:[#allocation11 + $0x68] sm:$0xf0] }
  0xe9   :  { %1263 = vmatpush.bf16.msra.mxu1 %v2235_v8  ;;  %1243 = vmatpush.bf16.msrb.mxu3 %v2391_v18  ;;  %v2803_v8 = vld [vmem:[#allocation8 + $0x14c] sm:$0xf]  ;;  %v2008_v18 = vld [vmem:[#allocation8 + $0x38] sm:$0xf0] }
  0xea   :  { %v2155_v15 = vor.u32 %v2803_v8, %v2152_v9  ;;  %v2011_v25 = vor.u32 %v2767_v17, %v2008_v18  ;;  %v2859_v47 = vld [vmem:[#allocation8 + $0x30c] sm:$0xf]  ;;  %v2506_v9 = vld [vmem:[#allocation11 + $0x10] sm:$0xf]  ;;  %v2498_v18 = vld [vmem:[#allocation11] sm:$0xf] }
  0xeb   :  { %1231 = vmatpush.bf16.msrb.mxu2 %v2247_v26  ;;  %v2867_v26 = vld [vmem:[#allocation8 + $0x34c] sm:$0xf] }
  0xec   :  { %1251 = vmatpush.bf16.msra.mxu0 %v2091_v21  ;;  %v2136_v21 = vld [vmem:[#allocation8 + $0x138] sm:$0xf0]  ;;  %v2903_v56 = vld [vmem:[#allocation11 + $0x64] sm:$0xf0] }
  0xed   :  { %1264 = vmatpush.bf16.msra.mxu1 %v2219_v22  ;;  %1244 = vmatpush.bf16.msrb.mxu3 %v2375_v5  ;;  %v2835_v22 = vld [vmem:[#allocation8 + $0x24c] sm:$0xf]  ;;  %v2139_v27 = vor.u32 %v2799_v20, %v2136_v21  ;;  %v2120_v5 = vld [vmem:[#allocation8 + $0x118] sm:$0xf0]  ;;  %v2547_v57 = vor.u32 %v2903_v56, %v2546_v54  ;;  %v2594_v20 = vld [vmem:[#allocation11 + $0xc0] sm:$0xf] }
  0xee   :  { %1232 = vmatmul.bf16.vlgmr.msrb.gmra.mxu2 %v3308_v59  ;;  %v2283_v32 = vor.u32 %v2835_v22, %v2280_v23  ;;  %v2123_v40 = vor.u32 %v2795_v34, %v2120_v5  ;;  %v2899_v60 = vld [vmem:[#allocation11 + $0x44] sm:$0xf0]  ;;  %v2904_v23 = vld [vmem:[#allocation11 + $0x74] sm:$0xf]  ;;  %v2937_v34 = vld [vmem:[#allocation11 + $0x174] sm:$0xf0] }
  0xef   :  { %1276 = vmatpush.bf16.msra.mxu2 %v2363_v30  ;;  %v1992_v30 = vld [vmem:[#allocation8 + $0x18] sm:$0xf0]  ;;  %v2895_v3 = vld [vmem:[#allocation11 + $0x24] sm:$0xf0]  ;;  %v2902_v5 = vld [vmem:[#allocation11 + $0x64] sm:$0xf] }
  0xf0   :  { %1252 = vmatpush.bf16.msra.mxu0 %v2075_v11  ;;  %1245 = vmatmul.bf16.vlgmr.msrb.gmra.mxu3 %v3311_v4  ;;  %v1995_v11 = vor.u32 %v2763_v29, %v1992_v30  ;;  %v2915_v22 = vld [vmem:[#allocation11 + $0xc4] sm:$0xf0]  ;;  %v2913_v29 = vld [vmem:[#allocation11 + $0xb4] sm:$0xf0]  ;;  %v2682_v30 = vld [vmem:[#allocation11 + $0x170] sm:$0xf] }
  0xf1   :  { %1289 = vmatpush.bf16.msra.mxu3 %v2491_v39  ;;  %1265 = vmatpush.bf16.msra.mxu1 %v2203_v41  ;;  %v2411_v39 = vor.u32 %v2867_v26, %v2408_v28  ;;  %v2863_v41 = vld [vmem:[#allocation8 + $0x32c] sm:$0xf]  ;;  %v2556_v26 = vld [vmem:[#allocation11 + $0x78] sm:$0xf0]  ;;  %v2586_v28 = vld [vmem:[#allocation11 + $0xb0] sm:$0xf] }
  0xf2   :  { %v2395_v46 = vor.u32 %v2863_v41, %v2392_v42  ;;  %v2578_v42 = vld [vmem:[#allocation11 + $0xa0] sm:$0xf]  ;;  %v2570_v54 = vld [vmem:[#allocation11 + $0x90] sm:$0xf]  ;;  %v2909_v56 = vld [vmem:[#allocation11 + $0x94] sm:$0xf0] }
  0xf3   :  { %1277 = vmatpush.bf16.msra.mxu2 %v2347_v45  ;;  %v2248_v45 = vld [vmem:[#allocation8 + $0x218] sm:$0xf0] }
  0xf4   :  { %1253 = vmatpush.bf16.msra.mxu0 %v2059_v51  ;;  %v2251_v49 = vor.u32 %v2827_v44, %v2248_v45  ;;  %v2554_v51 = vld [vmem:[#allocation11 + $0x70] sm:$0xf]  ;;  %v2674_v44 = vld [vmem:[#allocation11 + $0x160] sm:$0xf] }
  0xf5   :  { %1290 = vmatpush.bf16.msra.mxu3 %v2475_v50  ;;  %1266 = vmatpush.bf16.msra.mxu1 %v2187_v53  ;;  %v2379_v50 = vor.u32 %v2859_v47, %v2376_v48  ;;  %v2555_v53 = vor.u32 %v2905_v52, %v2554_v51  ;;  %v2900_v47 = vld [vmem:[#allocation11 + $0x54] sm:$0xf]  ;;  %v2540_v48 = vld [vmem:[#allocation11 + $0x58] sm:$0xf0] }
  0xf6   :  { %v2543_v51 = vor.u32 %v2900_v47, %v2540_v48  ;;  %v2925_v47 = vld [vmem:[#allocation11 + $0x114] sm:$0xf0] }
  0xf7   :  { %1278 = vmatpush.bf16.msra.mxu2 %v2331_v55  ;;  %v2538_v55 = vld [vmem:[#allocation11 + $0x50] sm:$0xf] }
  0xf8   :  { %1254 = vmatpush.bf16.msra.mxu0 %v2043_v0  ;;  %v2921_v0 = vld [vmem:[#allocation11 + $0xf4] sm:$0xf0] }
  0xf9   :  { %1291 = vmatpush.bf16.msra.mxu3 %v2459_v63  ;;  %1267 = vmatpush.bf16.msra.mxu1 %v2171_v2  ;;  %v2618_v63 = vld [vmem:[#allocation11 + $0xf0] sm:$0xf]  ;;  %v2514_v2 = vld [vmem:[#allocation11 + $0x20] sm:$0xf] }
  0xfa   :  { %v2619_v1 = vor.u32 %v2921_v0, %v2618_v63  ;;  %v2515_v6 = vor.u32 %v2895_v3, %v2514_v2  ;;  %v2562_v2 = vld [vmem:[#allocation11 + $0x80] sm:$0xf]  ;;  %v2907_v3 = vld [vmem:[#allocation11 + $0x84] sm:$0xf0] }
  0xfb   :  { %1279 = vmatpush.bf16.msra.mxu2 %v2315_v7  ;;  %v2919_v7 = vld [vmem:[#allocation11 + $0xe4] sm:$0xf0] }
  0xfc   :  { %1255 = vmatpush.bf16.msra.mxu0 %v2027_v13  ;;  %v2611_v8 = vor.u32 %v2919_v7, %v2610_v31  ;;  %v2917_v13 = vld [vmem:[#allocation11 + $0xd4] sm:$0xf0]  ;;  %v2563_v31 = vor.u32 %v2907_v3, %v2562_v2  ;;  %v2931_v7 = vld [vmem:[#allocation11 + $0x144] sm:$0xf0]  ;;  %v2588_v3 = vld [vmem:[#allocation11 + $0xb8] sm:$0xf0] }
  0xfd   :  { %1292 = vmatpush.bf16.msra.mxu3 %v2443_v12  ;;  %1268 = vmatpush.bf16.msra.mxu1 %v2155_v15  ;;  %v2507_v12 = vor.u32 %v2893_v35, %v2506_v9  ;;  %v2603_v15 = vor.u32 %v2917_v13, %v2602_v10  ;;  %v2524_v35 = vld [vmem:[#allocation11 + $0x38] sm:$0xf0]  ;;  %v2920_v10 = vld [vmem:[#allocation11 + $0xf4] sm:$0xf] }
  0xff   :  { %1280 = vmatpush.bf16.msra.mxu2 %v2299_v19  ;;  %v2891_v19 = vld [vmem:[#allocation11 + $0x4] sm:$0xf0] }
 0x100   :  { %1256 = vmatpush.bf16.msra.mxu0 %v2011_v25  ;;  %v2499_v21 = vor.u32 %v2891_v19, %v2498_v18  ;;  %v2595_v25 = vor.u32 %v2915_v22, %v2594_v20  ;;  %v2929_v18 = vld [vmem:[#allocation11 + $0x134] sm:$0xf0]  ;;  %v2516_v22 = vld [vmem:[#allocation11 + $0x28] sm:$0xf0] }
 0x101   :  { %1293 = vmatpush.bf16.msra.mxu3 %v2427_v24  ;;  %1269 = vmatpush.bf16.msra.mxu1 %v2139_v27  ;;  %v446_v24 = vperm.slane %v3327_v16, 0  ;;  %v2559_v27 = vor.u32 %v2904_v23, %v2556_v26  ;;  %v2918_v23 = vld [vmem:[#allocation11 + $0xe4] sm:$0xf] }
 0x103   :  { %1281 = vmatpush.bf16.msra.mxu2 %v2283_v32  ;;  %v2587_v32 = vor.u32 %v2913_v29, %v2586_v28 }
 0x104   :  { %1257 = vmatpush.bf16.msra.mxu0 %v1995_v11  ;;  %v2683_v11 = vor.u32 %v2937_v34, %v2682_v30  ;;  %v2927_v34 = vld [vmem:[#allocation11 + $0x124] sm:$0xf0] }
 0x105   :  { %1294 = vmatpush.bf16.msra.mxu3 %v2411_v39  ;;  %1270 = vmatpush.bf16.msra.mxu1 %v2123_v40  ;;  %v2551_v40 = vor.u32 %v2902_v5, %v2548_v37 }
 0x107   :  { %1282 = vmatpush.bf16.msra.mxu2 %v2267_v43  ;;  %1258 = vmatmul.bf16.vlgmr.msra.gmra.mxu0 %v3296_v33  ;;  %v2901_v33 = vld [vmem:[#allocation11 + $0x54] sm:$0xf0]  ;;  %v2911_v43 = vld [vmem:[#allocation11 + $0xa4] sm:$0xf0] }
 0x108   :  { %1271 = vmatmul.bf16.vlgmr.msra.gmra.mxu1 %v3301_v36  ;;  %1776 = vmatpush.bf16.msrb.mxu0 %v2555_v53  ;;  %v2539_v58 = vor.u32 %v2901_v33, %v2538_v55  ;;  %v2530_v36 = vld [vmem:[#allocation11 + $0x40] sm:$0xf]  ;;  %v2579_v45 = vor.u32 %v2911_v43, %v2578_v42  ;;  %v2571_v33 = vor.u32 %v2909_v56, %v2570_v54  ;;  %v2604_v42 = vld [vmem:[#allocation11 + $0xd8] sm:$0xf0]  ;;  %v2914_v54 = vld [vmem:[#allocation11 + $0xc4] sm:$0xf] }
 0x109   :  { %1295 = vmatpush.bf16.msra.mxu3 %v2395_v46  ;;  %v2531_v61 = vor.u32 %v2899_v60, %v2530_v36  ;;  %1789 = vmatpush.bf16.msrb.mxu1 %v2619_v1  ;;  %v2935_v46 = vld [vmem:[#allocation11 + $0x164] sm:$0xf0]  ;;  %v2898_v36 = vld [vmem:[#allocation11 + $0x44] sm:$0xf]  ;;  %v2532_v60 = vld [vmem:[#allocation11 + $0x48] sm:$0xf0] }
 0x10a   :  { %v2535_v63 = vor.u32 %v2898_v36, %v2532_v60  ;;  %v2596_v56 = vld [vmem:[#allocation11 + $0xc8] sm:$0xf0]  ;;  %v2626_v36 = vld [vmem:[#allocation11 + $0x100] sm:$0xf]  ;;  %v2923_v60 = vld [vmem:[#allocation11 + $0x104] sm:$0xf0] }
 0x10b   :  { %1283 = vmatpush.bf16.msra.mxu2 %v2251_v49 }
 0x10c   :  { %1777 = vmatpush.bf16.msrb.mxu0 %v2547_v57  ;;  %v2666_v57 = vld [vmem:[#allocation11 + $0x150] sm:$0xf] }
 0x10d   :  { %1296 = vmatpush.bf16.msra.mxu3 %v2379_v50  ;;  %1790 = vmatpush.bf16.msrb.mxu1 %v2611_v8  ;;  %v2675_v50 = vor.u32 %v2935_v46, %v2674_v44  ;;  %v2896_v8 = vld [vmem:[#allocation11 + $0x34] sm:$0xf]  ;;  %v2634_v46 = vld [vmem:[#allocation11 + $0x110] sm:$0xf] }
 0x10e   :  { %1284 = vmatmul.bf16.vlgmr.msra.gmra.mxu2 %v3308_v59  ;;  %v2897_v59 = vld [vmem:[#allocation11 + $0x34] sm:$0xf0] }
 0x10f   :  { %1802 = vmatpush.bf16.msrb.mxu2 %v2683_v11 }
 0x110   :  { %1297 = vmatmul.bf16.vlgmr.msra.gmra.mxu3 %v3311_v4  ;;  %1778 = vmatpush.bf16.msrb.mxu0 %v2539_v58  ;;  %v2523_v4 = vor.u32 %v2897_v59, %v2522_v62  ;;  %v2933_v58 = vld [vmem:[#allocation11 + $0x154] sm:$0xf0] }
 0x111   :  { %1791 = vmatpush.bf16.msrb.mxu1 %v2603_v15  ;;  %v2667_v59 = vor.u32 %v2933_v58, %v2666_v57 }
 0x113   :  { %1803 = vmatpush.bf16.msrb.mxu2 %v2675_v50  ;;  %v2890_v50 = vld [vmem:[#allocation11 + $0x4] sm:$0xf] }
 0x114   :  { %1779 = vmatpush.bf16.msrb.mxu0 %v2531_v61 }
 0x115   :  { %1792 = vmatpush.bf16.msrb.mxu1 %v2595_v25 }
 0x117   :  { %1804 = vmatpush.bf16.msrb.mxu2 %v2667_v59  ;;  %v2627_v59 = vor.u32 %v2923_v60, %v2626_v36  ;;  %v2930_v36 = vld [vmem:[#allocation11 + $0x144] sm:$0xf]  ;;  %v2660_v60 = vld [vmem:[#allocation11 + $0x148] sm:$0xf0] }
 0x118   :  { %1780 = vmatpush.bf16.msrb.mxu0 %v2523_v4  ;;  %v447_v4 = vperm.slane %v3327_v16, 1 }
 0x119   :  { %1793 = vmatpush.bf16.msrb.mxu1 %v2587_v32  ;;  %v2642_v32 = vld [vmem:[#allocation11 + $0x120] sm:$0xf] }
 0x11a   :  { %v2643_v37 = vor.u32 %v2927_v34, %v2642_v32  ;;  %v2730_v32 = vld [vmem:[#allocation11 + $0x1d0] sm:$0xf]  ;;  %v2949_v34 = vld [vmem:[#allocation11 + $0x1d4] sm:$0xf0] }
 0x11c   :  { %1781 = vmatpush.bf16.msrb.mxu0 %v2515_v6  ;;  %v2658_v6 = vld [vmem:[#allocation11 + $0x140] sm:$0xf] }
 0x11d   :  { %1794 = vmatpush.bf16.msrb.mxu1 %v2579_v45  ;;  %v2659_v9 = vor.u32 %v2931_v7, %v2658_v6  ;;  %v2684_v6 = vld [vmem:[#allocation11 + $0x178] sm:$0xf0]  ;;  %v448_v7 = vperm.slane %v3327_v16, 2 }
 0x11f   :  { %1805 = vmatpush.bf16.msrb.mxu2 %v2659_v9 }
 0x120   :  { %1782 = vmatpush.bf16.msrb.mxu0 %v2507_v12  ;;  %v2620_v12 = vld [vmem:[#allocation11 + $0xf8] sm:$0xf0] }
 0x121   :  { %1795 = vmatpush.bf16.msrb.mxu1 %v2571_v33  ;;  %v2623_v15 = vor.u32 %v2920_v10, %v2620_v12  ;;  %v2599_v33 = vor.u32 %v2914_v54, %v2596_v56  ;;  %v2906_v56 = vld [vmem:[#allocation11 + $0x84] sm:$0xf] }
 0x124   :  { %1783 = vmatpush.bf16.msrb.mxu0 %v2499_v21  ;;  %v2894_v21 = vld [vmem:[#allocation11 + $0x24] sm:$0xf] }
 0x125   :  { %1796 = vmatpush.bf16.msrb.mxu1 %v2563_v31  ;;  %v2519_v26 = vor.u32 %v2894_v21, %v2516_v22  ;;  %v2936_v31 = vld [vmem:[#allocation11 + $0x174] sm:$0xf] }
 0x128   :  { %1828 = vmatpush.bf16.msra.mxu0 %v2559_v27  ;;  %v2612_v27 = vld [vmem:[#allocation11 + $0xe8] sm:$0xf0] }
 0x129   :  { %1841 = vmatpush.bf16.msra.mxu1 %v2623_v15  ;;  %v2615_v29 = vor.u32 %v2918_v23, %v2612_v27 }
 0x12c   :  { %1829 = vmatpush.bf16.msra.mxu0 %v2551_v40 }
 0x12d   :  { %1842 = vmatpush.bf16.msra.mxu1 %v2615_v29 }
 0x130   :  { %1830 = vmatpush.bf16.msra.mxu0 %v2543_v51 }
 0x134   :  { %1831 = vmatpush.bf16.msra.mxu0 %v2535_v63  ;;  %v2746_v63 = vld [vmem:[#allocation11 + $0x1f0] sm:$0xf] }
 0x144   :  { %v1103_v14 = vpop.f32.mrf.mxu0 }
 0x145   :  { %v1116_v17 = vpop.f32.mrf.mxu1  ;;  %v1104_v38 = vadd.f32 %v1103_v14, %v446_v24  ;;  %v2527_v14 = vor.u32 %v2896_v8, %v2524_v35  ;;  %v2687_v35 = vor.u32 %v2936_v31, %v2684_v6 }
 0x147   :  { %v1117_v49 = vadd.f32 %v1116_v17, %v1104_v38  ;;  %v2650_v17 = vld [vmem:[#allocation11 + $0x130] sm:$0xf]  ;;  %1832 = vmatpush.bf16.msra.mxu0 %v2527_v14  ;;  %v2892_v38 = vld [vmem:[#allocation11 + $0x14] sm:$0xf]  ;;  %v2951_v14 = vld [vmem:[#allocation11 + $0x1e4] sm:$0xf0] }
 0x148   :  { %v2651_v20 = vor.u32 %v2929_v18, %v2650_v17  ;;  %v2910_v18 = vld [vmem:[#allocation11 + $0xa4] sm:$0xf] }
 0x14a   :  { %1806 = vmatpush.bf16.msrb.mxu2 %v2651_v20  ;;  %v2934_v20 = vld [vmem:[#allocation11 + $0x164] sm:$0xf] }
 0x14b   :  { %1833 = vmatpush.bf16.msra.mxu0 %v2519_v26 }
 0x14c   :  { %v1105_v39 = vpop.f32.mrf.mxu0 }
 0x14d   :  { %v1118_v41 = vpop.f32.mrf.mxu1  ;;  %v2508_v39 = vld [vmem:[#allocation11 + $0x18] sm:$0xf0] }
 0x14e   :  { %v2511_v40 = vor.u32 %v2892_v38, %v2508_v39  ;;  %v2916_v41 = vld [vmem:[#allocation11 + $0xd4] sm:$0xf]  ;;  %1807 = vmatpush.bf16.msrb.mxu2 %v2643_v37  ;;  %v2731_v39 = vor.u32 %v2949_v34, %v2730_v32 }
 0x14f   :  { %v2607_v45 = vor.u32 %v2916_v41, %v2604_v42 }
 0x150   :  { %1834 = vmatpush.bf16.msra.mxu0 %v2511_v40  ;;  %v2572_v40 = vld [vmem:[#allocation11 + $0x98] sm:$0xf0] }
 0x151   :  { %v1129_v52 = vpop.f32.mrf.mxu2  ;;  %1843 = vmatpush.bf16.msra.mxu1 %v2607_v45 }
 0x152   :  { %v1130_v53 = vadd.f32 %v1129_v52, %v1117_v49  ;;  %v1142_v55 = vpop.f32.mrf.mxu3  ;;  %v2635_v49 = vor.u32 %v2925_v47, %v2634_v46 }
 0x154   :  { %v3330_v61 = vadd.f32 %v1142_v55, %v1130_v53  ;;  %v1155_v62 = vpop.f32.mrf.mxu0  ;;  %v2500_v53 = vld [vmem:[#allocation11 + $0x8] sm:$0xf0]  ;;  %1808 = vmatpush.bf16.msrb.mxu2 %v2635_v49  ;;  %v2722_v49 = vld [vmem:[#allocation11 + $0x1c0] sm:$0xf] }
 0x155   :  { %v1168_v0 = vpop.f32.mrf.mxu1  ;;  %v1156_v24 = vadd.f32 %v1155_v62, %v447_v4  ;;  %v2503_v55 = vor.u32 %v2890_v50, %v2500_v53  ;;  %v2953_v4 = vld [vmem:[#allocation11 + $0x1f4] sm:$0xf0]  ;;  %1844 = vmatpush.bf16.msra.mxu1 %v2599_v33  ;;  %v2947_v50 = vld [vmem:[#allocation11 + $0x1c4] sm:$0xf0] }
 0x156   :  { %v2492_v1 = vmul.f32 -1.442695, %v3330_v61  ;;  %v2747_v2 = vor.u32 %v2953_v4, %v2746_v63  ;;  %v2723_v54 = vor.u32 %v2947_v50, %v2722_v49 }
 0x157   :  { %v1169_v11 = vadd.f32 %v1168_v0, %v1156_v24  ;;  %1835 = vmatpush.bf16.msra.mxu0 %v2503_v55  ;;  %v2912_v0 = vld [vmem:[#allocation11 + $0xb4] sm:$0xf]  ;;  %v2564_v55 = vld [vmem:[#allocation11 + $0x88] sm:$0xf0] }
 0x158   :  { %2981 = vpow2.f32 %v2492_v1  ;;  %v2591_v9 = vor.u32 %v2912_v0, %v2588_v3  ;;  %1809 = vmatpush.bf16.msrb.mxu2 %v2627_v59  ;;  %1815 = vmatpush.bf16.msrb.mxu3 %v2747_v2  ;;  %v2945_v59 = vld [vmem:[#allocation11 + $0x1b4] sm:$0xf0]  ;;  %v2652_v2 = vld [vmem:[#allocation11 + $0x138] sm:$0xf0] }
 0x159   :  { %v1131_v13 = vpop.f32.mrf.mxu2 }
 0x15a   :  { %v1144_v19 = vpop.f32.mrf.mxu3  ;;  %v2738_v13 = vld [vmem:[#allocation11 + $0x1e0] sm:$0xf]  ;;  %1845 = vmatpush.bf16.msra.mxu1 %v2591_v9  ;;  %v2943_v9 = vld [vmem:[#allocation11 + $0x1a4] sm:$0xf0] }
 0x15b   :  { %v2739_v17 = vor.u32 %v2951_v14, %v2738_v13  ;;  %v2580_v19 = vld [vmem:[#allocation11 + $0xa8] sm:$0xf0]  ;;  %v2926_v13 = vld [vmem:[#allocation11 + $0x124] sm:$0xf] }
 0x15c   :  { %v1157_v25 = vpop.f32.mrf.mxu0  ;;  %1854 = vmatpush.bf16.msra.mxu2 %v2687_v35  ;;  %v2583_v24 = vor.u32 %v2910_v18, %v2580_v19  ;;  %v2644_v14 = vld [vmem:[#allocation11 + $0x128] sm:$0xf0] }
 0x15d   :  { %v1170_v28 = vpop.f32.mrf.mxu1  ;;  %v2676_v25 = vld [vmem:[#allocation11 + $0x168] sm:$0xf0]  ;;  %1816 = vmatpush.bf16.msrb.mxu3 %v2739_v17  ;;  %v2647_v18 = vor.u32 %v2926_v13, %v2644_v14  ;;  %v2942_v14 = vld [vmem:[#allocation11 + $0x1a4] sm:$0xf] }
 0x15e   :  { %v2982_v30 = vpop.eup %2981  ;;  %v2679_v28 = vor.u32 %v2934_v20, %v2676_v25  ;;  %1846 = vmatpush.bf16.msra.mxu1 %v2583_v24  ;;  %v2698_v20 = vld [vmem:[#allocation11 + $0x190] sm:$0xf]  ;;  %v2924_v25 = vld [vmem:[#allocation11 + $0x114] sm:$0xf] }
 0x15f   :  { %v3334_v5 = vadd.f32 1.0, %v2982_v30 }
 0x160   :  { %1855 = vmatpush.bf16.msra.mxu2 %v2679_v28 }
 0x161   :  { %2983 = vrcp.f32 %v3334_v5  ;;  %v1181_v43 = vpop.f32.mrf.mxu2  ;;  %v1329_v12 = vand.u32 2147483648, %v3334_v5  ;;  %v1327_v22 = vand.u32 2147483647, %v3334_v5  ;;  %vm1323_vm2 = vweird.f32 %v3334_v5  ;;  %1817 = vmatpush.bf16.msrb.mxu3 %v2731_v39 }
 0x162   :  { %v1182_v44 = vadd.f32 %v1181_v43, %v1169_v11  ;;  %v1194_v48 = vpop.f32.mrf.mxu3  ;;  %v2908_v11 = vld [vmem:[#allocation11 + $0x94] sm:$0xf] }
 0x163   :  { %v1330_v37 = vor.u32 1.1754944e-38, %v1329_v12  ;;  %vm1328_vm4 = vcmp.eq.f32.partialorder %v1327_v22, 8.507059e+37  ;;  %v2575_v42 = vor.u32 %v2908_v11, %v2572_v40  ;;  %v2932_v43 = vld [vmem:[#allocation11 + $0x154] sm:$0xf]  ;;  %v2922_v40 = vld [vmem:[#allocation11 + $0x104] sm:$0xf] }
 0x164   :  { %v3337_v51 = vadd.f32 %v1194_v48, %v1182_v44  ;;  %v1207_v52 = vpop.f32.mrf.mxu0  ;;  %v2668_v44 = vld [vmem:[#allocation11 + $0x158] sm:$0xf0] }
 0x165   :  { %v3339_v57 = vpop.f32.mrf.mxu1  ;;  %v1208_v26 = vadd.f32 %v1207_v52, %v448_v7  ;;  %v2671_v48 = vor.u32 %v2932_v43, %v2668_v44  ;;  %1847 = vmatpush.bf16.msra.mxu1 %v2575_v42  ;;  %1818 = vmatpush.bf16.msrb.mxu3 %v2723_v54  ;;  %v2952_v44 = vld [vmem:[#allocation11 + $0x1f4] sm:$0xf] }
 0x166   :  { %v2493_v58 = vmul.f32 -1.442695, %v3337_v51 }
 0x167   :  { %v2984_v62 = vpop.eup %2983  ;;  %1856 = vmatpush.bf16.msra.mxu2 %v2671_v48 }
 0x168   :  { %v1319_v1 = vmul.f32 %v2984_v62, %v3334_v5  ;;  %2985 = vpow2.f32 %v2493_v58  ;;  %vm1324_vm1 = vweird.f32 %v2984_v62  ;;  %v1221_v5 = vadd.f32 %v3339_v57, %v1208_v26  ;;  %v2636_v26 = vld [vmem:[#allocation11 + $0x118] sm:$0xf0] }
 0x169   :  { %v1183_v8 = vpop.f32.mrf.mxu2  ;;  %vm1325_vm3 = vmor %vm1323_vm2, %vm1324_vm1  ;;  %v2567_v58 = vor.u32 %v2906_v56, %v2564_v55  ;;  %v2948_v55 = vld [vmem:[#allocation11 + $0x1d4] sm:$0xf] }
 0x16a   :  { %v1320_v10 = vsub.f32 1.0, %v1319_v1  ;;  %v1196_v15 = vpop.f32.mrf.mxu3  ;;  %v2928_v1 = vld [vmem:[#allocation11 + $0x134] sm:$0xf]  ;;  %v2706_v8 = vld [vmem:[#allocation11 + $0x1a0] sm:$0xf] }
 0x16b   :  { %1848 = vmatpush.bf16.msra.mxu1 %v2567_v58  ;;  %v2655_v31 = vor.u32 %v2928_v1, %v2652_v2  ;;  %v2707_v12 = vor.u32 %v2943_v9, %v2706_v8  ;;  %v2732_v58 = vld [vmem:[#allocation11 + $0x1d8] sm:$0xf0] }
 0x16c   :  { %v1321_v21 = vmul.f32 %v2984_v62, %v1320_v10  ;;  %v1209_v23 = vpop.f32.mrf.mxu0 }
 0x16d   :  { %v1222_v27 = vpop.f32.mrf.mxu1 }
 0x16e   :  { %v2986_v29 = vpop.eup %2985  ;;  %v1322_v30 = vadd.f32 %v2984_v62, %v1321_v21  ;;  %v2941_v21 = vld [vmem:[#allocation11 + $0x194] sm:$0xf0] }
 0x16f   :  { %v3348_v38 = vadd.f32 1.0, %v2986_v29  ;;  %v2699_v24 = vor.u32 %v2941_v21, %v2698_v20  ;;  %v2639_v29 = vor.u32 %v2924_v25, %v2636_v26  ;;  %v2940_v20 = vld [vmem:[#allocation11 + $0x194] sm:$0xf]  ;;  %v2700_v21 = vld [vmem:[#allocation11 + $0x198] sm:$0xf0] }
 0x170   :  { %v1326_v41 = vsel %vm1325_vm3, %v2984_v62, %v1322_v30  ;;  %v2714_v62 = vld [vmem:[#allocation11 + $0x1b0] sm:$0xf]  ;;  %v2692_v25 = vld [vmem:[#allocation11 + $0x188] sm:$0xf0] }
 0x171   :  { %v1331_v45 = vsel %vm1328_vm4, %v1330_v37, %v1326_v41  ;;  %2987 = vrcp.f32 %v3348_v38  ;;  %v1233_v47 = vpop.f32.mrf.mxu2  ;;  %v2715_v0 = vor.u32 %v2945_v59, %v2714_v62  ;;  %v1344_v35 = vand.u32 2147483648, %v3348_v38  ;;  %v2690_v37 = vld [vmem:[#allocation11 + $0x180] sm:$0xf]  ;;  %v2628_v41 = vld [vmem:[#allocation11 + $0x108] sm:$0xf0] }
 0x172   :  { %v1378_v46 = vmul.f32 %v1331_v45, %v3330_v61  ;;  %v1234_v52 = vadd.f32 %v1233_v47, %v1221_v5  ;;  %v2663_v61 = vor.u32 %v2930_v36, %v2660_v60  ;;  %v1342_v17 = vand.u32 2147483647, %v3348_v38  ;;  %v2748_v45 = vld [vmem:[#allocation11 + $0x1f8] sm:$0xf0]  ;;  %v2740_v47 = vld [vmem:[#allocation11 + $0x1e8] sm:$0xf0] }
 0x173   :  { %v1246_v53 = vpop.f32.mrf.mxu3  ;;  %1819 = vmatpush.bf16.msrb.mxu3 %v2715_v0  ;;  %vm1338_vm6 = vweird.f32 %v3348_v38  ;;  %v1345_v23 = vor.u32 1.1754944e-38, %v1344_v35  ;;  %v2631_v43 = vor.u32 %v2922_v40, %v2628_v41  ;;  %v449_v5 = vperm.slane %v3327_v16, 3  ;;  %v2724_v0 = vld [vmem:[#allocation11 + $0x1c8] sm:$0xf0]  ;;  %v2944_v35 = vld [vmem:[#allocation11 + $0x1b4] sm:$0xf] }
 0x174   :  { %v3353_v33 = vpack.c.bf16 %v1378_v46, %v1378_v46  ;;  %v3355_v57 = vadd.f32 %v1246_v53, %v1234_v52  ;;  %1857 = vmatpush.bf16.msra.mxu2 %v2663_v61  ;;  %vm1343_vm8 = vcmp.eq.f32.partialorder %v1342_v17, 8.507059e+37  ;;  %v2751_v46 = vor.u32 %v2952_v44, %v2748_v45 }
 0x175   :  { %v2735_v16 = vor.u32 %v2948_v55, %v2732_v58 }
 0x176   :  { %1784 = vmatmul.bf16.vlgmr.msrb.gmra.mxu0 %v3353_v33  ;;  %v2494_v4 = vmul.f32 -1.442695, %v3355_v57 }
 0x177   :  { %v2988_v63 = vpop.eup %2987  ;;  %1820 = vmatpush.bf16.msrb.mxu3 %v2707_v12 }
 0x178   :  { %v1334_v3 = vmul.f32 %v2988_v63, %v3348_v38  ;;  %2989 = vpow2.f32 %v2494_v4  ;;  %vm1339_vm5 = vweird.f32 %v2988_v63  ;;  %1858 = vmatpush.bf16.msra.mxu2 %v2655_v31  ;;  %v2939_v38 = vld [vmem:[#allocation11 + $0x184] sm:$0xf0]  ;;  %v2946_v4 = vld [vmem:[#allocation11 + $0x1c4] sm:$0xf] }
 0x179   :  { %v1235_v7 = vpop.f32.mrf.mxu2  ;;  %vm1340_vm7 = vmor %vm1338_vm6, %vm1339_vm5  ;;  %v2691_v11 = vor.u32 %v2939_v38, %v2690_v37 }
 0x17a   :  { %v1335_v6 = vsub.f32 1.0, %v1334_v3  ;;  %v2727_v3 = vor.u32 %v2946_v4, %v2724_v0 }
 0x17b   :  { %v1248_v10 = vpop.f32.mrf.mxu3  ;;  %1821 = vmatpush.bf16.msrb.mxu3 %v2699_v24  ;;  %v2938_v24 = vld [vmem:[#allocation11 + $0x184] sm:$0xf] }
 0x17c   :  { %v1336_v15 = vmul.f32 %v2988_v63, %v1335_v6  ;;  %1859 = vmatpush.bf16.msra.mxu2 %v2647_v18  ;;  %v2716_v10 = vld [vmem:[#allocation11 + $0x1b8] sm:$0xf0]  ;;  %v2695_v26 = vor.u32 %v2938_v24, %v2692_v25 }
 0x17d   :  { %v2719_v12 = vor.u32 %v2944_v35, %v2716_v10 }
 0x17e   :  { %v1337_v19 = vadd.f32 %v2988_v63, %v1336_v15  ;;  %v2990_v22 = vpop.eup %2989  ;;  %v2708_v15 = vld [vmem:[#allocation11 + $0x1a8] sm:$0xf0] }
 0x17f   :  { %v1316_v28 = vadd.f32 1.0, %v2990_v22  ;;  %1822 = vmatpush.bf16.msrb.mxu3 %v2691_v11 }
 0x180   :  { %v1341_v27 = vsel %vm1340_vm7, %v2988_v63, %v1337_v19  ;;  %1860 = vmatpush.bf16.msra.mxu2 %v2639_v29  ;;  %v2711_v19 = vor.u32 %v2942_v14, %v2708_v15 }
 0x181   :  { %v1346_v30 = vsel %vm1343_vm8, %v1345_v23, %v1341_v27  ;;  %2991 = vrcp.f32 %v1316_v28  ;;  %v1359_v36 = vand.u32 2147483648, %v1316_v28  ;;  %vm1353_vm10 = vweird.f32 %v1316_v28 }
 0x182   :  { %v1379_v32 = vmul.f32 %v1346_v30, %v3337_v51  ;;  %v2950_v51 = vld [vmem:[#allocation11 + $0x1e4] sm:$0xf] }
 0x183   :  { %1867 = vmatpush.bf16.msra.mxu3 %v2751_v46  ;;  %v2743_v49 = vor.u32 %v2950_v51, %v2740_v47  ;;  %v1360_v1 = vor.u32 1.1754944e-38, %v1359_v36 }
 0x184   :  { %v1259_v34 = vpop.f32.mrf.mxu0  ;;  %v1383_v42 = vpack.c.bf16 %v1379_v32, %v1379_v32  ;;  %1861 = vmatpush.bf16.msra.mxu2 %v2631_v43 }
 0x185   :  { %v1272_v39 = vpop.f32.mrf.mxu1  ;;  %v1260_v52 = vadd.f32 %v1259_v34, %v449_v5 }
 0x186   :  { %1797 = vmatmul.bf16.vlgmr.msrb.gmra.mxu1 %v1383_v42  ;;  %1836 = vmatmul.bf16.vlgmr.msra.gmra.mxu0 %v3353_v33  ;;  %v1357_v33 = vand.u32 2147483647, %v1316_v28 }
 0x187   :  { %v2992_v48 = vpop.eup %2991  ;;  %1868 = vmatpush.bf16.msra.mxu3 %v2743_v49  ;;  %v1273_v61 = vadd.f32 %v1272_v39, %v1260_v52 }
 0x188   :  { %v1349_v50 = vmul.f32 %v2992_v48, %v1316_v28  ;;  %vm1354_vm9 = vweird.f32 %v2992_v48  ;;  %vm1358_vm12 = vcmp.eq.f32.partialorder %v1357_v33, 8.507059e+37 }
 0x189   :  { %vm1355_vm11 = vmor %vm1353_vm10, %vm1354_vm9 }
 0x18a   :  { %v1350_v54 = vsub.f32 1.0, %v1349_v50  ;;  %v1450_v50 = vld [vmem:[%s3379_s6] sm:$0x3]  ;;  %s3193_s6 = smov [#allocation13]  }
 0x18b   :  { %1869 = vmatpush.bf16.msra.mxu3 %v2735_v16  ;;  %v1453_v33 = vperm.slane %v1450_v50, 1  ;;  %s1925_s8 = sshll.u32 %s3193_s6, 4  ;;  %s1926_s8 = int_to_ptr.vmem [resolvable:$true] %s1925_s8 }
 0x18c   :  { %v1261_v53 = vpop.f32.mrf.mxu0  ;;  %v1351_v60 = vmul.f32 %v2992_v48, %v1350_v54 }
 0x18d   :  { %v1274_v56 = vpop.f32.mrf.mxu1  ;;  %v1452_v53 = vperm.slane %v1450_v50, 0 }
 0x18e   :  { %v1352_v59 = vadd.f32 %v2992_v48, %v1351_v60 }
 0x18f   :  { %1870 = vmatpush.bf16.msra.mxu3 %v2727_v3 }
 0x190   :  { %v1356_v31 = vsel %vm1355_vm11, %v2992_v48, %v1352_v59 }
 0x191   :  { %v1285_v62 = vpop.f32.mrf.mxu2  ;;  %v1361_v7 = vsel %vm1358_vm12, %v1360_v1, %v1356_v31 }
 0x192   :  { %v1286_v63 = vadd.f32 %v1285_v62, %v1273_v61  ;;  %v1380_v8 = vmul.f32 %v1361_v7, %v3355_v57  ;;  %v2703_v57 = vor.u32 %v2940_v20, %v2700_v21 }
 0x193   :  { %v1298_v2 = vpop.f32.mrf.mxu3  ;;  %1871 = vmatpush.bf16.msra.mxu3 %v2719_v12 }
 0x194   :  { %v1299_v6 = vadd.f32 %v1298_v2, %v1286_v63  ;;  %v1384_v13 = vpack.c.bf16 %v1380_v8, %v1380_v8 }
 0x196   :  { %v2495_v9 = vmul.f32 -1.442695, %v1299_v6  ;;  %1849 = vmatmul.bf16.vlgmr.msra.gmra.mxu1 %v1383_v42  ;;  %1810 = vmatmul.bf16.vlgmr.msrb.gmra.mxu2 %v1384_v13 }
 0x197   :  { %1872 = vmatpush.bf16.msra.mxu3 %v2711_v19 }
 0x198   :  { %2993 = vpow2.f32 %v2495_v9 }
 0x199   :  { %v1287_v17 = vpop.f32.mrf.mxu2 }
 0x19b   :  { %v1300_v18 = vpop.f32.mrf.mxu3  ;;  %1873 = vmatpush.bf16.msra.mxu3 %v2703_v57 }
 0x19e   :  { %v2994_v22 = vpop.eup %2993 }
 0x19f   :  { %v1317_v23 = vadd.f32 1.0, %v2994_v22  ;;  %1874 = vmatpush.bf16.msra.mxu3 %v2695_v26 }
 0x1a1   :  { %2995 = vrcp.f32 %v1317_v23  ;;  %v1374_v30 = vand.u32 2147483648, %v1317_v23  ;;  %v1372_v34 = vand.u32 2147483647, %v1317_v23  ;;  %vm1368_vm14 = vweird.f32 %v1317_v23 }
 0x1a3   :  { %v1375_v38 = vor.u32 1.1754944e-38, %v1374_v30  ;;  %vm1373_vm0 = vcmp.eq.f32.partialorder %v1372_v34, 8.507059e+37 }
 0x1a6   :  { %1862 = vmatmul.bf16.vlgmr.msra.gmra.mxu2 %v1384_v13 }
 0x1a7   :  { %v2996_v27 = vpop.eup %2995 }
 0x1a8   :  { %v1364_v28 = vmul.f32 %v2996_v27, %v1317_v23  ;;  %vm1369_vm13 = vweird.f32 %v2996_v27 }
 0x1a9   :  { %vm1370_vm15 = vmor %vm1368_vm14, %vm1369_vm13 }
 0x1aa   :  { %v1365_v29 = vsub.f32 1.0, %v1364_v28 }
 0x1ac   :  { %v1366_v32 = vmul.f32 %v2996_v27, %v1365_v29 }
 0x1ae   :  { %v1367_v37 = vadd.f32 %v2996_v27, %v1366_v32 }
 0x1b0   :  { %v1371_v39 = vsel %vm1370_vm15, %v2996_v27, %v1367_v37 }
 0x1b1   :  { %v1376_v11 = vsel %vm1373_vm0, %v1375_v38, %v1371_v39 }
 0x1b2   :  { %v1381_v40 = vmul.f32 %v1376_v11, %v1299_v6 }
 0x1b4   :  { %v1385_v41 = vpack.c.bf16 %v1381_v40, %v1381_v40 }
 0x1b6   :  { %1823 = vmatmul.bf16.vlgmr.msrb.gmra.mxu3 %v1385_v41 }
 0x1c6   :  { %1875 = vmatmul.bf16.vlgmr.msra.gmra.mxu3 %v1385_v41 }
 0x1f3   :  { %v1785_v42 = vpop.f32.mrf.mxu0 }
 0x1f4   :  { %v1786_v54 = vadd.f32 %v1785_v42, %v1452_v53 }
 0x1fb   :  { %v1787_v43 = vpop.f32.mrf.mxu0 }
 0x203   :  { %v1798_v44 = vpop.f32.mrf.mxu1  ;;  %v1837_v45 = vpop.f32.mrf.mxu0 }
 0x204   :  { %v1799_v55 = vadd.f32 %v1798_v44, %v1786_v54  ;;  %v1838_v59 = vadd.f32 %v1837_v45, %v1453_v33 }
 0x20b   :  { %v1800_v5 = vpop.f32.mrf.mxu1  ;;  %v1839_v46 = vpop.f32.mrf.mxu0 }
 0x213   :  { %v1850_v51 = vpop.f32.mrf.mxu1 }
 0x214   :  { %v1851_v4 = vadd.f32 %v1850_v51, %v1838_v59 }
 0x219   :  { %v1811_v47 = vpop.f32.mrf.mxu2 }
 0x21a   :  { %v1812_v58 = vadd.f32 %v1811_v47, %v1799_v55 }
 0x21b   :  { %v1852_v48 = vpop.f32.mrf.mxu1 }
 0x221   :  { %v1813_v49 = vpop.f32.mrf.mxu2 }
 0x229   :  { %v1863_v52 = vpop.f32.mrf.mxu2 }
 0x22a   :  { %v1864_v0 = vadd.f32 %v1863_v52, %v1851_v4 }
 0x231   :  { %v1865_v56 = vpop.f32.mrf.mxu2 }
 0x239   :  { %v1824_v36 = vpop.f32.mrf.mxu3 }
 0x23a   :  { %v1825_v16 = vadd.f32 %v1824_v36, %v1812_v58 }
 0x23c   :  { %v2752_v60 = vmul.f32 -1.442695, %v1825_v16 }
 0x23e   :  { %2997 = vpow2.f32 %v2752_v60 }
 0x241   :  { %v1826_v61 = vpop.f32.mrf.mxu3 }
 0x244   :  { %v2998_v62 = vpop.eup %2997 }
 0x245   :  { %v1886_v63 = vadd.f32 1.0, %v2998_v62 }
 0x247   :  { %2999 = vrcp.f32 %v1886_v63  ;;  %v1899_v9 = vand.u32 2147483648, %v1886_v63  ;;  %v1897_v10 = vand.u32 2147483647, %v1886_v63  ;;  %vm1893_vm2 = vweird.f32 %v1886_v63 }
 0x249   :  { %v1876_v1 = vpop.f32.mrf.mxu3  ;;  %v1900_v15 = vor.u32 1.1754944e-38, %v1899_v9  ;;  %vm1898_vm4 = vcmp.eq.f32.partialorder %v1897_v10, 8.507059e+37 }
 0x24a   :  { %v1877_v2 = vadd.f32 %v1876_v1, %v1864_v0 }
 0x24c   :  { %v2753_v3 = vmul.f32 -1.442695, %v1877_v2 }
 0x24d   :  { %v3000_v31 = vpop.eup %2999 }
 0x24e   :  { %v1889_v6 = vmul.f32 %v3000_v31, %v1886_v63  ;;  %3001 = vpow2.f32 %v2753_v3  ;;  %vm1894_vm1 = vweird.f32 %v3000_v31 }
 0x24f   :  { %vm1895_vm3 = vmor %vm1893_vm2, %vm1894_vm1 }
 0x250   :  { %v1890_v7 = vsub.f32 1.0, %v1889_v6 }
 0x251   :  { %v1878_v8 = vpop.f32.mrf.mxu3 }
 0x252   :  { %v1891_v35 = vmul.f32 %v3000_v31, %v1890_v7 }
 0x254   :  { %v3002_v12 = vpop.eup %3001  ;;  %v1892_v13 = vadd.f32 %v3000_v31, %v1891_v35 }
 0x255   :  { %v1887_v14 = vadd.f32 1.0, %v3002_v12 }
 0x256   :  { %v1896_v17 = vsel %vm1895_vm3, %v3000_v31, %v1892_v13 }
 0x257   :  { %3003 = vrcp.f32 %v1887_v14  ;;  %v1901_v18 = vsel %vm1898_vm4, %v1900_v15, %v1896_v17  ;;  %v1914_v22 = vand.u32 2147483648, %v1887_v14  ;;  %v1912_v57 = vand.u32 2147483647, %v1887_v14 }
 0x258   :  { %1918 = vst [vmem:[#allocation13] sm:$0xff] %v1901_v18  ;;  %vm1908_vm6 = vweird.f32 %v1887_v14 }
 0x259   :  { %v1915_v25 = vor.u32 1.1754944e-38, %v1914_v22  ;;  %vm1913_vm8 = vcmp.eq.f32.partialorder %v1912_v57, 8.507059e+37 }
 0x25d   :  { %v3004_v19 = vpop.eup %3003 }
 0x25e   :  { %v1904_v20 = vmul.f32 %v3004_v19, %v1887_v14  ;;  %vm1909_vm5 = vweird.f32 %v3004_v19 }
 0x25f   :  { %vm1910_vm7 = vmor %vm1908_vm6, %vm1909_vm5 }
 0x260   :  { %v1905_v21 = vsub.f32 1.0, %v1904_v20 }
 0x262   :  { %v1906_v23 = vmul.f32 %v3004_v19, %v1905_v21 }
 0x264   :  { %v1907_v24 = vadd.f32 %v3004_v19, %v1906_v23 }
 0x266   :  { %v1911_v26 = vsel %vm1910_vm7, %v3004_v19, %v1907_v24 }
 0x267   :  { %v1916_v27 = vsel %vm1913_vm8, %v1915_v25, %v1911_v26 }
 0x268   :  { %1919 = vst [vmem:[#allocation13 + $0x8] sm:$0xff] %v1916_v27 }
 0x269   :  { %1930 = dma.vmem_to_hbm [thread:$0]  %s1926_s8, 256, %s1928_s11, [#allocation4]  }
 0x26a   :  { %3181 = dma.done.wait [#allocation4], 256  }
 0x26b   :  { %3182 = vsyncadd [#allocation4], 4294967040 }
 0x26c   :  { %1935 = vsyncpa [#allocation3], 1 }
 0x26d   :  { %1936 = vsyncpa [#allocation6], 1 }
 0x26e   :  { %1937 = vsyncpa [#allocation9], 1 }
 0x26f   :  { %1938 = vsyncpa [#allocation12], 1 }
 0x270   :  { %1939 = vsyncpa [#allocation4], 1 }

</bundles_post_ra>
